<compile_context>
chip_gen: v5e
topology: v5e:2x2
jax: 0.10.0
libtpu: 0.0.40
codegen_flags: <defaults>
</compile_context>

<pallas_src>
import functools

import jax
import jax.numpy as jnp
from jax.experimental import pallas as pl
from jax.experimental.pallas import tpu as pltpu


def _round_up(v, m):
    return (v + m - 1) // m * m


def _double_conv_kernel(x_ref, w1_ref, b1_ref, w2_ref, b2_ref, o_ref, *, w):
    # x_ref : (Cin_p,  bB*H*W)   activations, flattened (batch, h, w) in lanes
    # w1_ref: (Cmid_p, 9*Cin_p)  columns ordered (kh, kw, ci); out-chan in sublanes
    # b1_ref: (Cmid_p, 1)
    # w2_ref: (Cout,   9*Cmid_p)
    # b2_ref: (Cout,   1)
    # o_ref : (Cout,   bB*H*W)   lane-dense output slab (garbage at h>=H-4 / w>=W-4)
    n = x_ref.shape[-1]

    x = x_ref[...]
    w1 = w1_ref[...]
    b1 = b1_ref[...]
    w2 = w2_ref[...]
    b2 = b2_ref[...]

    def conv3x3_relu(a, wmat, bias):
        # One XLU lane-rotate per kernel tap; taps stacked along sublanes
        # (all pieces have a multiple-of-8 row count -> aligned concat),
        # then a single MXU matmul does the (tap, channel) contraction.
        taps = []
        for kh in range(3):
            for kw in range(3):
                s = kh * w + kw
                taps.append(a if s == 0 else pltpu.roll(a, shift=n - s, axis=1))
        stacked = jnp.concatenate(taps, axis=0)            # (9*C_in, N)
        y = jnp.dot(wmat, stacked,                         # MXU: M=C_out, K=9*C_in
                    preferred_element_type=jnp.float32,
                    precision=jax.lax.Precision.HIGHEST)
        return jnp.maximum(y + bias, 0.0)

    mid = conv3x3_relu(x, w1, b1)          # (Cmid_p, N)
    out = conv3x3_relu(mid, w2, b2)        # (Cout,   N)

    # Dropout2d(0.2): identity in eval mode (see TODO at top of file).
    o_ref[...] = out.astype(o_ref.dtype)   # lane-dense, unmasked store


def simple_convolution(x_nchw, w1, b1, w2, b2):
    """Forward pass of SimpleConvolution (eval mode).

    x_nchw: (B, Cin, H, W); w1: (Cmid, Cin, 3, 3); w2: (Cout, Cmid, 3, 3).
    Returns (B, Cout, H-4, W-4).
    """
    B, Cin, H, W = x_nchw.shape
    Cmid = w1.shape[0]
    Cout = w2.shape[0]
    assert H >= 5 and W >= 5, "valid double 3x3 conv needs H, W >= 5"
    H_out, W_out = H - 4, W - 4
    HW = H * W
    f32 = jnp.float32

    # Pad channel counts to multiples of 8 so the in-kernel sublane concat of the
    # rolled taps is tile-aligned; the zero channels contribute exactly zero.
    Cin_p = _round_up(Cin, 8)
    Cmid_p = _round_up(Cmid, 8)

    # Activations: fold batch into the lane axis -> (Cin_p, B*H*W).
    x_t = jnp.transpose(x_nchw.astype(f32), (1, 0, 2, 3)).reshape(Cin, B * HW)
    x_t = jnp.pad(x_t, ((0, Cin_p - Cin), (0, 0)))

    # Weights: (O, I, kh, kw) -> pad channels -> (O, kh, kw, I) -> (O, 9*I);
    # column order (kh, kw, ci) matches the kernel's tap stacking order.
    w1_p = jnp.pad(w1.astype(f32),
                   ((0, Cmid_p - Cmid), (0, Cin_p - Cin), (0, 0), (0, 0)))
    w2_p = jnp.pad(w2.astype(f32),
                   ((0, 0), (0, Cmid_p - Cmid), (0, 0), (0, 0)))
    w1_t = jnp.transpose(w1_p, (0, 2, 3, 1)).reshape(Cmid_p, 9 * Cin_p)
    w2_t = jnp.transpose(w2_p, (0, 2, 3, 1)).reshape(Cout, 9 * Cmid_p)
    b1_r = jnp.pad(b1.astype(f32), (0, Cmid_p - Cmid)).reshape(Cmid_p, 1)
    b2_r = b2.astype(f32).reshape(Cout, 1)

    # Batch block: large enough to amortize the ~0.35 us/step pipeline overhead,
    # small enough that the f32 stacked/mid temporaries fit comfortably in the
    # default scoped VMEM on v5e/v6e/v7x (v7x has only 64 MiB physical).
    if B <= 32:
        bB = B
    else:
        bB = max(d for d in (32, 16, 8, 4, 2, 1) if B % d == 0)
    n_blk = bB * HW

    flops = 2 * B * HW * 9 * (Cin * Cmid + Cmid * Cout)
    bytes_accessed = 4 * (Cin_p * B * HW + Cout * B * HW
                          + Cmid_p * 9 * Cin_p + Cout * 9 * Cmid_p
                          + Cmid_p + Cout)

    kernel = functools.partial(_double_conv_kernel, w=W)

    out_flat = pl.pallas_call(
        kernel,
        out_shape=jax.ShapeDtypeStruct((Cout, B * HW), f32),
        grid_spec=pltpu.PrefetchScalarGridSpec(
            num_scalar_prefetch=0,
            grid=(B // bB,),                                   # batch-blocked grid
            in_specs=[
                pl.BlockSpec((Cin_p, n_blk), lambda i: (0, i)),       # activations
                pl.BlockSpec((Cmid_p, 9 * Cin_p), lambda i: (0, 0)),  # weights: DMA'd once
                pl.BlockSpec((Cmid_p, 1), lambda i: (0, 0)),
                pl.BlockSpec((Cout, 9 * Cmid_p), lambda i: (0, 0)),
                pl.BlockSpec((Cout, 1), lambda i: (0, 0)),
            ],
            out_specs=pl.BlockSpec((Cout, n_blk), lambda i: (0, i)),
        ),
        compiler_params=pltpu.CompilerParams(
            dimension_semantics=("parallel",)),                # v7x: 2 TCs share batch
        cost_estimate=pl.CostEstimate(flops=flops, transcendentals=0,
                                      bytes_accessed=bytes_accessed),
    )(x_t, w1_t, b1_r, w2_t, b2_r)

    # Un-fold batch/spatial and drop the wrap-around garbage border.
    out = jnp.transpose(out_flat.reshape(Cout, B, H, W), (1, 0, 2, 3))
    return out[:, :, :H_out, :W_out]


def _reference(x, w1, b1, w2, b2):
    dn = ("NCHW", "OIHW", "NCHW")
    y = jax.lax.conv_general_dilated(x, w1, (1, 1), "VALID",
                                     dimension_numbers=dn,
                                     precision=jax.lax.Precision.HIGHEST)
    y = jnp.maximum(y + b1[None, :, None, None], 0.0)
    y = jax.lax.conv_general_dilated(y, w2, (1, 1), "VALID",
                                     dimension_numbers=dn,
                                     precision=jax.lax.Precision.HIGHEST)
    y = jnp.maximum(y + b2[None, :, None, None], 0.0)
    return y  # dropout is identity in eval mode


if __name__ == "__main__":
    key = jax.random.PRNGKey(0)
    kx, k1, k2, k3, k4 = jax.random.split(key, 5)

    # SimpleConvolution(input_channel=4, output_channel=8) at a small size.
    B, Cin, Cout, H, W = 2, 4, 8, 16, 16

    x = jax.random.normal(kx, (B, Cin, H, W), jnp.float32)
    w1 = jax.random.normal(k1, (Cout, Cin, 3, 3), jnp.float32) * 0.1
    b1 = jax.random.normal(k2, (Cout,), jnp.float32) * 0.1
    w2 = jax.random.normal(k3, (Cout, Cout, 3, 3), jnp.float32) * 0.1
    b2 = jax.random.normal(k4, (Cout,), jnp.float32) * 0.1

    out = jax.block_until_ready(simple_convolution(x, w1, b1, w2, b2))

    ref = _reference(x, w1, b1, w2, b2)
    assert out.shape == (B, Cout, H - 4, W - 4), out.shape
    max_err = float(jnp.max(jnp.abs(out - ref)))
    assert jnp.allclose(out, ref, atol=2e-3, rtol=2e-3), max_err

    print("KERNEL_OK")
</pallas_src>

<mosaic_0001>
module attributes {stable_mosaic.version = 11 : i64} {
  func.func @_double_conv_kernel(%arg0: i32, %arg1: memref<8x512xf32, #tpu.memory_space<vmem>>, %arg2: memref<8x72xf32, #tpu.memory_space<vmem>>, %arg3: memref<8x1xf32, #tpu.memory_space<vmem>>, %arg4: memref<8x72xf32, #tpu.memory_space<vmem>>, %arg5: memref<8x1xf32, #tpu.memory_space<vmem>>, %arg6: memref<8x512xf32, #tpu.memory_space<vmem>>) attributes {dimension_semantics = [#tpu.dimension_semantics<parallel>], iteration_bounds = array<i64: 1>, scalar_prefetch = 0 : i64, scratch_operands = 0 : i64, tpu.core_type = #tpu.core_type<tc>, window_params = [{transform_indices = @transform_0, window_bounds = array<i64: 8, 512>}, {pipeline_mode = #tpu.pipeline_mode<synchronous>, transform_indices = @transform_1, window_bounds = array<i64: 8, 72>}, {pipeline_mode = #tpu.pipeline_mode<synchronous>, transform_indices = @transform_2, window_bounds = array<i64: 8, 1>}, {pipeline_mode = #tpu.pipeline_mode<synchronous>, transform_indices = @transform_3, window_bounds = array<i64: 8, 72>}, {pipeline_mode = #tpu.pipeline_mode<synchronous>, transform_indices = @transform_4, window_bounds = array<i64: 8, 1>}, {transform_indices = @transform_5, window_bounds = array<i64: 8, 512>}]} {
    %c0 = arith.constant 0 : index
    %c0_0 = arith.constant 0 : index
    %0 = vector.load %arg1[%c0, %c0_0] : memref<8x512xf32, #tpu.memory_space<vmem>>, vector<8x512xf32>
    %c0_1 = arith.constant 0 : index
    %c0_2 = arith.constant 0 : index
    %1 = vector.load %arg2[%c0_1, %c0_2] : memref<8x72xf32, #tpu.memory_space<vmem>>, vector<8x72xf32>
    %c0_3 = arith.constant 0 : index
    %c0_4 = arith.constant 0 : index
    %2 = vector.load %arg3[%c0_3, %c0_4] : memref<8x1xf32, #tpu.memory_space<vmem>>, vector<8x1xf32>
    %c0_5 = arith.constant 0 : index
    %c0_6 = arith.constant 0 : index
    %3 = vector.load %arg4[%c0_5, %c0_6] : memref<8x72xf32, #tpu.memory_space<vmem>>, vector<8x72xf32>
    %c0_7 = arith.constant 0 : index
    %c0_8 = arith.constant 0 : index
    %4 = vector.load %arg5[%c0_7, %c0_8] : memref<8x1xf32, #tpu.memory_space<vmem>>, vector<8x1xf32>
    %c511_i32 = arith.constant 511 : i32
    %5 = tpu.dynamic_rotate %0 by %c511_i32 dim 1 : vector<8x512xf32>, i32 -> vector<8x512xf32>
    %c510_i32 = arith.constant 510 : i32
    %6 = tpu.dynamic_rotate %0 by %c510_i32 dim 1 : vector<8x512xf32>, i32 -> vector<8x512xf32>
    %c496_i32 = arith.constant 496 : i32
    %7 = tpu.dynamic_rotate %0 by %c496_i32 dim 1 : vector<8x512xf32>, i32 -> vector<8x512xf32>
    %c495_i32 = arith.constant 495 : i32
    %8 = tpu.dynamic_rotate %0 by %c495_i32 dim 1 : vector<8x512xf32>, i32 -> vector<8x512xf32>
    %c494_i32 = arith.constant 494 : i32
    %9 = tpu.dynamic_rotate %0 by %c494_i32 dim 1 : vector<8x512xf32>, i32 -> vector<8x512xf32>
    %c480_i32 = arith.constant 480 : i32
    %10 = tpu.dynamic_rotate %0 by %c480_i32 dim 1 : vector<8x512xf32>, i32 -> vector<8x512xf32>
    %c479_i32 = arith.constant 479 : i32
    %11 = tpu.dynamic_rotate %0 by %c479_i32 dim 1 : vector<8x512xf32>, i32 -> vector<8x512xf32>
    %c478_i32 = arith.constant 478 : i32
    %12 = tpu.dynamic_rotate %0 by %c478_i32 dim 1 : vector<8x512xf32>, i32 -> vector<8x512xf32>
    %13 = tpu.concatenate %0, %5, %6, %7, %8, %9, %10, %11, %12 in 0 : vector<8x512xf32>, vector<8x512xf32>, vector<8x512xf32>, vector<8x512xf32>, vector<8x512xf32>, vector<8x512xf32>, vector<8x512xf32>, vector<8x512xf32>, vector<8x512xf32> -> vector<72x512xf32>
    %cst = arith.constant dense<0.000000e+00> : vector<8x512xf32>
    %14 = tpu.matmul %1, %13, %cst {dimension_numbers = #tpu.dot_dimension_numbers<[1], [0], [0], [1], [0, 0, 1, 1], [], []>, precision = #tpu.contract_precision<fp32>} : vector<8x72xf32>, vector<72x512xf32>, vector<8x512xf32> -> vector<8x512xf32>
    %15 = vector.broadcast %2 : vector<8x1xf32> to vector<8x512xf32>
    %16 = arith.addf %14, %15 : vector<8x512xf32>
    %cst_9 = arith.constant 0.000000e+00 : f32
    %17 = vector.broadcast %cst_9 : f32 to vector<8x512xf32>
    %18 = arith.maximumf %16, %17 : vector<8x512xf32>
    %c511_i32_10 = arith.constant 511 : i32
    %19 = tpu.dynamic_rotate %18 by %c511_i32_10 dim 1 : vector<8x512xf32>, i32 -> vector<8x512xf32>
    %c510_i32_11 = arith.constant 510 : i32
    %20 = tpu.dynamic_rotate %18 by %c510_i32_11 dim 1 : vector<8x512xf32>, i32 -> vector<8x512xf32>
    %c496_i32_12 = arith.constant 496 : i32
    %21 = tpu.dynamic_rotate %18 by %c496_i32_12 dim 1 : vector<8x512xf32>, i32 -> vector<8x512xf32>
    %c495_i32_13 = arith.constant 495 : i32
    %22 = tpu.dynamic_rotate %18 by %c495_i32_13 dim 1 : vector<8x512xf32>, i32 -> vector<8x512xf32>
    %c494_i32_14 = arith.constant 494 : i32
    %23 = tpu.dynamic_rotate %18 by %c494_i32_14 dim 1 : vector<8x512xf32>, i32 -> vector<8x512xf32>
    %c480_i32_15 = arith.constant 480 : i32
    %24 = tpu.dynamic_rotate %18 by %c480_i32_15 dim 1 : vector<8x512xf32>, i32 -> vector<8x512xf32>
    %c479_i32_16 = arith.constant 479 : i32
    %25 = tpu.dynamic_rotate %18 by %c479_i32_16 dim 1 : vector<8x512xf32>, i32 -> vector<8x512xf32>
    %c478_i32_17 = arith.constant 478 : i32
    %26 = tpu.dynamic_rotate %18 by %c478_i32_17 dim 1 : vector<8x512xf32>, i32 -> vector<8x512xf32>
    %27 = tpu.concatenate %18, %19, %20, %21, %22, %23, %24, %25, %26 in 0 : vector<8x512xf32>, vector<8x512xf32>, vector<8x512xf32>, vector<8x512xf32>, vector<8x512xf32>, vector<8x512xf32>, vector<8x512xf32>, vector<8x512xf32>, vector<8x512xf32> -> vector<72x512xf32>
    %cst_18 = arith.constant dense<0.000000e+00> : vector<8x512xf32>
    %28 = tpu.matmul %3, %27, %cst_18 {dimension_numbers = #tpu.dot_dimension_numbers<[1], [0], [0], [1], [0, 0, 1, 1], [], []>, precision = #tpu.contract_precision<fp32>} : vector<8x72xf32>, vector<72x512xf32>, vector<8x512xf32> -> vector<8x512xf32>
    %29 = vector.broadcast %4 : vector<8x1xf32> to vector<8x512xf32>
    %30 = arith.addf %28, %29 : vector<8x512xf32>
    %cst_19 = arith.constant 0.000000e+00 : f32
    %31 = vector.broadcast %cst_19 : f32 to vector<8x512xf32>
    %32 = arith.maximumf %30, %31 : vector<8x512xf32>
    %c0_20 = arith.constant 0 : index
    %c0_21 = arith.constant 0 : index
    %33 = vector.load %arg6[%c0_20, %c0_21] : memref<8x512xf32, #tpu.memory_space<vmem>>, vector<8x512xf32>
    tpu.vector_store %arg6[%c0_20, %c0_21], %32 {strides = array<i32>} : memref<8x512xf32, #tpu.memory_space<vmem>>, vector<8x512xf32>,
    return
  }
  func.func @transform_0(%arg0: i32) -> (i32, i32) {
    %c0_i32 = arith.constant 0 : i32
    %c0_i32_0 = arith.constant 0 : i32
    return %c0_i32, %arg0 : i32, i32
  }
  func.func @transform_1(%arg0: i32) -> (i32, i32) {
    %c0_i32 = arith.constant 0 : i32
    %c0_i32_0 = arith.constant 0 : i32
    %c0_i32_1 = arith.constant 0 : i32
    return %c0_i32, %c0_i32_0 : i32, i32
  }
  func.func @transform_2(%arg0: i32) -> (i32, i32) {
    %c0_i32 = arith.constant 0 : i32
    %c0_i32_0 = arith.constant 0 : i32
    %c0_i32_1 = arith.constant 0 : i32
    return %c0_i32, %c0_i32_0 : i32, i32
  }
  func.func @transform_3(%arg0: i32) -> (i32, i32) {
    %c0_i32 = arith.constant 0 : i32
    %c0_i32_0 = arith.constant 0 : i32
    %c0_i32_1 = arith.constant 0 : i32
    return %c0_i32, %c0_i32_0 : i32, i32
  }
  func.func @transform_4(%arg0: i32) -> (i32, i32) {
    %c0_i32 = arith.constant 0 : i32
    %c0_i32_0 = arith.constant 0 : i32
    %c0_i32_1 = arith.constant 0 : i32
    return %c0_i32, %c0_i32_0 : i32, i32
  }
  func.func @transform_5(%arg0: i32) -> (i32, i32) {
    %c0_i32 = arith.constant 0 : i32
    %c0_i32_0 = arith.constant 0 : i32
    return %c0_i32, %arg0 : i32, i32
  }
}

</mosaic_0001>

<bundles_post_ra>
// kernel: tpu_custom_call.1
= control target key start
LH: loop header
LB: loop body
LE: loop exit
PB: predicated region body
PF: predicated region fallthrough
CT: control target
= control target key end

     0   :  { %10 = vsyncpa [#allocation3], 0  ;;  %s4085_s0 = inlined_call_operand.hbm [shape: f32[8,512], index: 0, kind: input, shape index: {}]   ;;  %s4086_s1 = inlined_call_operand.vmem [shape: f32[8,72], index: 1, kind: input, shape index: {}]   ;;  %s4087_s2 = inlined_call_operand.vmem [shape: f32[8,1], index: 2, kind: input, shape index: {}]   ;;  %s4088_s3 = inlined_call_operand.vmem [shape: f32[8,72], index: 3, kind: input, shape index: {}]   ;;  %s4089_s4 = inlined_call_operand.vmem [shape: f32[8,1], index: 4, kind: input, shape index: {}]   ;;  %s4090_s5 = inlined_call_operand.hbm [shape: f32[8,512], index: 5, kind: output, shape index: {}]  }
   0x1   :  { %11 = vsyncpa [#allocation4], 0  ;;  %s17_s20 = sshll.u32 %s4085_s0, 4  ;;  %s2356_s21 = smov [#allocation2]   ;;  %s18_s20 = int_to_ptr.hbm [resolvable:$true] %s17_s20 }
   0x2   :  { %s19_s22 = sshll.u32 %s2356_s21, 4  ;;  %s20_s22 = int_to_ptr.vmem [resolvable:$true] %s19_s22 }
   0x3   :  { %22 = dma.hbm_to_vmem [thread:$0]  %s18_s20, 512, %s20_s22, [#allocation3]  }
   0x4   :  { %2352 = dma.done.wait [#allocation3], 512  }
   0x5   :  { %2353 = vsyncadd [#allocation3], 4294966784  ;;  %v2400_v0 = vld [vmem:[#allocation2] sm:$0xff]  ;;  %s2357_s23 = smov 96   ;;  %s2358_s24 = smov 95   ;;  %v2408_v1 = vld [vmem:[#allocation2 + $0x8] sm:$0xff]  ;;  %v51_v6 = vlaneseq }
   0x6   :  { %110 = vrot.lane.b32.xlu2 %v2400_v0, %s2357_s23  ;;  %123 = vrot.lane.b32.xlu1 %v2400_v0, %s2358_s24  ;;  %s2359_s25 = smov 94   ;;  %s2360_s0 = smov 111   ;;  %v2422_v2 = vld [vmem:[#allocation2 + $0x10] sm:$0xff]  ;;  %v2454_v3 = vld [vmem:[#allocation2 + $0x18] sm:$0xff]  ;;  %v2614_v61 = vand.u32 4294901760, %v2400_v0  ;;  %vm154_vm7 = vcmask 588800  }
   0x7   :  { %136 = vrot.lane.b32.xlu0 %v2400_v0, %s2359_s25  ;;  %s2361_s26 = smov 110   ;;  %s2362_s27 = smov 112   ;;  %4122 = vst [vmem:[#allocation8_spill] sm:$0xff] %v2454_v3  ;;  %v2476_v7 = vand.u32 127, %v51_v6 }
   0x8   :  { %s2363_s28 = smov 126   ;;  %s2364_s29 = smov 127  }
   0x9   :  { %vm118_vm0 = vcmp.lt.s32.totalorder %v2476_v7, 96  ;;  %vm131_vm1 = vcmp.lt.s32.totalorder %v2476_v7, 95  ;;  %vm144_vm2 = vcmp.lt.s32.totalorder %v2476_v7, 94  ;;  %vm105_vm3 = vcmp.lt.s32.totalorder %v2476_v7, 110  ;;  %s2281_s13 = sshll.u32 %s4090_s5, 4  ;;  %s2282_s13 = int_to_ptr.hbm [resolvable:$true] %s2281_s13 }
   0xa   :  { %vm92_vm4 = vcmp.lt.s32.totalorder %v2476_v7, 111  ;;  %vm79_vm5 = vcmp.lt.s32.totalorder %v2476_v7, 112  ;;  %vm66_vm6 = vcmp.lt.s32.totalorder %v2476_v7, 126  ;;  %vm53_vm8 = vcmp.lt.s32.totalorder %v2476_v7, 127 }
   0xe   :  { %112 = vrot.lane.b32.xlu2 %v2408_v1, %s2357_s23  ;;  %125 = vrot.lane.b32.xlu1 %v2408_v1, %s2358_s24 }
   0xf   :  { %138 = vrot.lane.b32.xlu0 %v2408_v1, %s2359_s25 }
  0x16   :  { %84 = vrot.lane.b32.xlu2 %v2400_v0, %s2360_s0  ;;  %99 = vrot.lane.b32.xlu1 %v2408_v1, %s2361_s26 }
  0x17   :  { %97 = vrot.lane.b32.xlu0 %v2400_v0, %s2361_s26 }
  0x1e   :  { %71 = vrot.lane.b32.xlu2 %v2400_v0, %s2362_s27  ;;  %140 = vrot.lane.b32.xlu1 %v2422_v2, %s2359_s25 }
  0x1f   :  { %86 = vrot.lane.b32.xlu0 %v2408_v1, %s2360_s0 }
  0x26   :  { %58 = vrot.lane.b32.xlu2 %v2400_v0, %s2363_s28  ;;  %127 = vrot.lane.b32.xlu1 %v2422_v2, %s2358_s24 }
  0x27   :  { %73 = vrot.lane.b32.xlu0 %v2408_v1, %s2362_s27 }
  0x2e   :  { %43 = vrot.lane.b32.xlu2 %v2400_v0, %s2364_s29  ;;  %114 = vrot.lane.b32.xlu1 %v2422_v2, %s2357_s23 }
  0x2f   :  { %60 = vrot.lane.b32.xlu0 %v2408_v1, %s2363_s28 }
  0x36   :  { %88 = vrot.lane.b32.xlu2 %v2422_v2, %s2360_s0  ;;  %101 = vrot.lane.b32.xlu1 %v2422_v2, %s2361_s26 }
  0x37   :  { %45 = vrot.lane.b32.xlu0 %v2408_v1, %s2364_s29 }
  0x3e   :  { %47 = vrot.lane.b32.xlu2 %v2422_v2, %s2364_s29  ;;  %62 = vrot.lane.b32.xlu1 %v2422_v2, %s2363_s28 }
  0x3f   :  { %75 = vrot.lane.b32.xlu0 %v2422_v2, %s2362_s27 }
  0x46   :  { %116 = vrot.lane.b32.xlu2 %v2454_v3, %s2357_s23  ;;  %129 = vrot.lane.b32.xlu1 %v2454_v3, %s2358_s24 }
  0x47   :  { %142 = vrot.lane.b32.xlu0 %v2454_v3, %s2359_s25 }
  0x4e   :  { %77 = vrot.lane.b32.xlu2 %v2454_v3, %s2362_s27  ;;  %90 = vrot.lane.b32.xlu1 %v2454_v3, %s2360_s0 }
  0x4f   :  { %103 = vrot.lane.b32.xlu0 %v2454_v3, %s2361_s26 }
  0x56   :  { %49 = vrot.lane.b32.xlu1 %v2454_v3, %s2364_s29 }
  0x57   :  { %64 = vrot.lane.b32.xlu0 %v2454_v3, %s2363_s28 }
  0x60   :  { %v2472_v4 = vpop.permute.xlu2 %110 }
  0x68   :  { %v2474_v5 = vpop.permute.xlu2 %112 }
  0x69   :  { %v121_v11 = vsel %vm118_vm0, %v2472_v4, %v2474_v5 }
  0x6a   :  { %v2490_v12 = vand.u32 4294901760, %v121_v11 }
  0x6c   :  { %v2507_v19 = vsub.f32 %v121_v11, %v2490_v12 }
  0x6e   :  { %v4097_v25 = vand.u32 4294901760, %v2507_v19 }
  0x70   :  { %v2478_v8 = vpop.permute.xlu2 %84  ;;  %v214_v34 = vsub.f32 %v2507_v19, %v4097_v25 }
  0x71   :  { %4123 = vst [vmem:[#allocation9_spill] sm:$0xff] %v2478_v8 }
  0x72   :  { %v215_v37 = vand.u32 4294901760, %v214_v34 }
  0x78   :  { %v2480_v9 = vpop.permute.xlu1 %123  ;;  %v2495_v14 = vpop.permute.xlu2 %71 }
  0x79   :  { %v2483_v10 = vpop.permute.xlu0 %136  ;;  %4124 = vst [vmem:[#allocation10_spill] sm:$0xff] %v2495_v14 }
  0x80   :  { %v2493_v13 = vpop.permute.xlu1 %125  ;;  %v2543_v31 = vpop.permute.xlu2 %58 }
  0x81   :  { %v134_v15 = vsel %vm131_vm1, %v2480_v9, %v2493_v13  ;;  %v139_v16 = vpop.permute.xlu0 %138  ;;  %4125 = vst [vmem:[#allocation11_spill] sm:$0xff] %v2543_v31 }
  0x82   :  { %v2501_v17 = vand.u32 4294901760, %v134_v15  ;;  %v147_v18 = vsel %vm144_vm2, %v2483_v10, %v139_v16 }
  0x83   :  { %v2509_v20 = vand.u32 4294901760, %v147_v18 }
  0x84   :  { %v2512_v21 = vsub.f32 %v134_v15, %v2501_v17 }
  0x85   :  { %v2515_v22 = vsub.f32 %v147_v18, %v2509_v20  ;;  %166 = vmatpush.msra.mxu0 %v2509_v20  ;;  %306 = vmatpush.msra.mxu3 %v2509_v20 }
  0x86   :  { %v4100_v23 = vand.u32 4294901760, %v2512_v21 }
  0x87   :  { %168 = vmatpush.msra.mxu0 %v2501_v17  ;;  %267 = vmatpush.msra.mxu2 %v2515_v22  ;;  %v201_v24 = vand.u32 4294901760, %v2515_v22 }
  0x88   :  { %308 = vmatpush.msra.mxu3 %v2501_v17  ;;  %v2526_v26 = vpop.permute.xlu1 %99  ;;  %v208_v29 = vsub.f32 %v2512_v21, %v4100_v23  ;;  %v2569_v45 = vpop.permute.xlu2 %43 }
  0x89   :  { %170 = vmatpush.msra.mxu0 %v2490_v12  ;;  %270 = vmatpush.msra.mxu2 %v2512_v21  ;;  %v2530_v27 = vpop.permute.xlu0 %97  ;;  %v202_v28 = vsub.f32 %v2515_v22, %v201_v24  ;;  %4126 = vst [vmem:[#allocation12_spill] sm:$0xff] %v2569_v45 }
  0x8a   :  { %310 = vmatpush.msra.mxu3 %v2490_v12  ;;  %v108_v30 = vsel %vm105_vm3, %v2530_v27, %v2526_v26  ;;  %v209_v36 = vand.u32 4294901760, %v208_v29  ;;  %v2640_v29 = vsub.f32 %v2400_v0, %v2614_v61 }
  0x8b   :  { %v2545_v32 = vand.u32 4294901760, %v108_v30  ;;  %273 = vmatpush.msra.mxu2 %v2507_v19  ;;  %v203_v33 = vand.u32 4294901760, %v202_v28 }
  0x8d   :  { %v2552_v35 = vsub.f32 %v108_v30, %v2545_v32  ;;  %172 = vmatpush.msra.mxu0 %v2545_v32  ;;  %204 = vmatpush.msra.mxu1 %v203_v33  ;;  %v39_v30 = vld [vmem:[%s4086_s1] sm:$0xff] }
  0x8e   :  { %312 = vmatpush.msra.mxu3 %v2545_v32 }
  0x8f   :  { %210 = vmatpush.msra.mxu1 %v209_v36  ;;  %276 = vmatpush.msra.mxu2 %v2552_v35  ;;  %v4094_v38 = vand.u32 4294901760, %v2552_v35 }
  0x90   :  { %v2559_v39 = vpop.permute.xlu1 %140  ;;  %v2604_v57 = vpop.permute.xlu2 %88 }
  0x91   :  { %216 = vmatpush.msra.mxu1 %v215_v37  ;;  %v87_v40 = vpop.permute.xlu0 %86  ;;  %v220_v41 = vsub.f32 %v2552_v35, %v4094_v38  ;;  %v146_v54 = vsel %vm144_vm2, %v139_v16, %v2559_v39 }
  0x92   :  { %v95_v42 = vsel %vm92_vm4, %v2478_v8, %v87_v40  ;;  %v2606_v58 = vand.u32 4294901760, %v146_v54 }
  0x93   :  { %v2567_v43 = vand.u32 4294901760, %v95_v42  ;;  %v221_v44 = vand.u32 4294901760, %v220_v41  ;;  %v156_v41 = vsel %vm154_vm7, %v39_v30, 0 }
  0x94   :  { %v2632_v16 = vsub.f32 %v146_v54, %v2606_v58 }
  0x95   :  { %v2572_v46 = vsub.f32 %v95_v42, %v2567_v43  ;;  %174 = vmatpush.msra.mxu0 %v2567_v43  ;;  %222 = vmatpush.msra.mxu1 %v221_v44  ;;  %v4096_v44 = vand.u32 4294901760, %v2640_v29 }
  0x96   :  { %314 = vmatpush.msra.mxu3 %v2567_v43 }
  0x97   :  { %279 = vmatpush.msra.mxu2 %v2572_v46  ;;  %v4093_v47 = vand.u32 4294901760, %v2572_v46 }
  0x98   :  { %v2579_v48 = vpop.permute.xlu1 %127 }
  0x99   :  { %v2581_v49 = vpop.permute.xlu0 %73  ;;  %v226_v50 = vsub.f32 %v2572_v46, %v4093_v47  ;;  %v133_v56 = vsel %vm131_vm1, %v2493_v13, %v2579_v48  ;;  %v94_v13 = vsel %vm92_vm4, %v87_v40, %v2604_v57  ;;  %v4095_v40 = vand.u32 4294901760, %v2632_v16 }
  0x9a   :  { %v82_v51 = vsel %vm79_vm5, %v2495_v14, %v2581_v49  ;;  %v2616_v62 = vand.u32 4294901760, %v133_v56  ;;  %v2652_v36 = vand.u32 4294901760, %v94_v13  ;;  %v250_v47 = vsub.f32 %v2640_v29, %v4096_v44 }
  0x9b   :  { %v2590_v52 = vand.u32 4294901760, %v82_v51  ;;  %v227_v53 = vand.u32 4294901760, %v226_v50  ;;  %v452_v30 = vsub.f32 %v2632_v16, %v4095_v40 }
  0x9c   :  { %v2646_v33 = vsub.f32 %v133_v56, %v2616_v62  ;;  %v2675_v56 = vsub.f32 %v94_v13, %v2652_v36  ;;  %v251_v3 = vand.u32 4294901760, %v250_v47 }
  0x9d   :  { %v2596_v55 = vsub.f32 %v82_v51, %v2590_v52  ;;  %176 = vmatpush.msra.mxu0 %v2590_v52  ;;  %228 = vmatpush.msra.mxu1 %v227_v53 }
  0x9e   :  { %316 = vmatpush.msra.mxu3 %v2590_v52  ;;  %v4098_v54 = vand.u32 4294901760, %v2646_v33 }
  0x9f   :  { %282 = vmatpush.msra.mxu2 %v2596_v55  ;;  %v4092_v59 = vand.u32 4294901760, %v2596_v55 }
  0xa0   :  { %v2611_v60 = vpop.permute.xlu1 %114  ;;  %v458_v40 = vsub.f32 %v2646_v33, %v4098_v54 }
  0xa1   :  { %v120_v63 = vsel %vm118_vm0, %v2474_v5, %v2611_v60  ;;  %v61_v6 = vpop.permute.xlu0 %60  ;;  %v232_v11 = vsub.f32 %v2596_v55, %v4092_v59  ;;  %v2690_v59 = vpop.permute.xlu2 %47 }
  0xa2   :  { %v69_v15 = vsel %vm66_vm6, %v2543_v31, %v61_v6  ;;  %v2634_v18 = vand.u32 4294901760, %v120_v63  ;;  %v459_v22 = vand.u32 4294901760, %v458_v40 }
  0xa3   :  { %v2636_v28 = vand.u32 4294901760, %v69_v15  ;;  %v233_v5 = vand.u32 4294901760, %v232_v11 }
  0xa4   :  { %v2657_v0 = vsub.f32 %v120_v63, %v2634_v18 }
  0xa5   :  { %v2649_v34 = vsub.f32 %v69_v15, %v2636_v28  ;;  %178 = vmatpush.msra.mxu0 %v2636_v28  ;;  %234 = vmatpush.msra.mxu1 %v233_v5  ;;  %v2682_v15 = vand.u32 4294901760, %v156_v41 }
  0xa6   :  { %318 = vmatpush.msra.mxu3 %v2636_v28 }
  0xa7   :  { %285 = vmatpush.msra.mxu2 %v2649_v34  ;;  %v4091_v37 = vand.u32 4294901760, %v2649_v34  ;;  %v2712_v25 = vsub.f32 %v156_v41, %v2682_v15 }
  0xa8   :  { %v2663_v42 = vpop.permute.xlu1 %101 }
  0xa9   :  { %v107_v50 = vsel %vm105_vm3, %v2526_v26, %v2663_v42  ;;  %v46_v51 = vpop.permute.xlu0 %45  ;;  %v238_v53 = vsub.f32 %v2649_v34, %v4091_v37  ;;  %v4099_v37 = vand.u32 4294901760, %v2657_v0  ;;  %v2753_v40 = vand.u32 4294901760, %v2712_v25 }
  0xaa   :  { %v2677_v63 = vand.u32 4294901760, %v107_v50  ;;  %v56_v11 = vsel %vm53_vm8, %v2569_v45, %v46_v51  ;;  %v55_v38 = vsel %vm53_vm8, %v46_v51, %v2690_v59  ;;  %v453_v51 = vand.u32 4294901760, %v452_v30 }
  0xab   :  { %v2684_v5 = vand.u32 4294901760, %v56_v11  ;;  %v239_v26 = vand.u32 4294901760, %v238_v53  ;;  %v2720_v54 = vand.u32 4294901760, %v55_v38  ;;  %v2731_v30 = vand.u32 4294901760, %v2408_v1 }
  0xac   :  { %v2693_v13 = vsub.f32 %v107_v50, %v2677_v63 }
  0xad   :  { %v2702_v53 = vsub.f32 %v56_v11, %v2684_v5  ;;  %180 = vmatpush.msra.mxu0 %v2684_v5  ;;  %240 = vmatpush.msra.mxu1 %v239_v26  ;;  %v464_v11 = vsub.f32 %v2657_v0, %v4099_v37 }
  0xae   :  { %320 = vmatpush.msra.mxu3 %v2684_v5  ;;  %v4104_v50 = vand.u32 4294901760, %v2693_v13 }
  0xaf   :  { %182 = vmatpush.msra.mxu0 %v2614_v61  ;;  %288 = vmatpush.msra.mxu2 %v2702_v53  ;;  %v243_v26 = vand.u32 4294901760, %v2702_v53 }
  0xb0   :  { %322 = vmatpush.msra.mxu3 %v2614_v61  ;;  %v2725_v41 = vpop.permute.xlu1 %62  ;;  %v470_v44 = vsub.f32 %v2693_v13, %v4104_v50 }
  0xb1   :  { %340 = vmatpush.msrb.mxu0 %v201_v24  ;;  %v68_v37 = vsel %vm66_vm6, %v61_v6, %v2725_v41  ;;  %v2736_v23 = vpop.permute.xlu0 %75  ;;  %291 = vmatpush.msra.mxu2 %v2640_v29  ;;  %v244_v24 = vsub.f32 %v2702_v53, %v243_v26  ;;  %v4128_v6 = vand.u32 4294901760, %v2675_v56  ;;  %v465_v53 = vand.u32 4294901760, %v464_v11 }
  0xb2   :  { %454 = vmatpush.msrb.mxu3 %v453_v51  ;;  %v2740_v45 = vand.u32 4294901760, %v68_v37  ;;  %v81_v50 = vsel %vm79_vm5, %v2581_v49, %v2736_v23  ;;  %v4127_v51 = vand.u32 4294901760, %v2512_v21  ;;  %v471_v8 = vand.u32 4294901760, %v470_v44  ;;  %294 = vmatmul.f32.vlgmr.msra.gmra.mxu2 %v2712_v25 }
  0xb3   :  { %416 = vmatpush.msrb.mxu2 %v2606_v58  ;;  %v476_v31 = vsub.f32 %v2675_v56, %v4128_v6  ;;  %v2755_v47 = vand.u32 4294901760, %v81_v50  ;;  %v245_v14 = vand.u32 4294901760, %v244_v24  ;;  %v2759_v21 = vsub.f32 %v55_v38, %v2720_v54  ;;  %326 = vmatmul.f32.vlgmr.msra.gmra.mxu3 %v2753_v40 }
  0xb4   :  { %344 = vmatpush.msrb.mxu0 %v4127_v51  ;;  %460 = vmatpush.msrb.mxu3 %v459_v22  ;;  %v2762_v49 = vsub.f32 %v68_v37, %v2740_v45  ;;  %v4129_v51 = vand.u32 4294901760, %v2507_v19  ;;  %v2769_v6 = vsub.f32 %v2408_v1, %v2731_v30  ;;  %v4130_v38 = vand.u32 4294901760, %v2552_v35 }
  0xb5   :  { %418 = vmatpush.msrb.mxu2 %v2616_v62  ;;  %v2772_v11 = vsub.f32 %v81_v50, %v2755_v47  ;;  %246 = vmatpush.msra.mxu1 %v245_v14  ;;  %v477_v19 = vand.u32 4294901760, %v476_v31  ;;  %v186_v1 = vsub.f32 %v2712_v25, %v2753_v40  ;;  %v4131_v50 = vand.u32 4294901760, %v2572_v46 }
  0xb6   :  { %348 = vmatpush.msrb.mxu0 %v4129_v51  ;;  %466 = vmatpush.msrb.mxu3 %v465_v53  ;;  %v487_v37 = vand.u32 4294901760, %v2762_v49  ;;  %v493_v14 = vand.u32 4294901760, %v2759_v21  ;;  %v499_v35 = vand.u32 4294901760, %v2769_v6  ;;  %v4133_v22 = vand.u32 4294901760, %v2649_v34 }
  0xb7   :  { %420 = vmatpush.msrb.mxu2 %v2634_v18  ;;  %252 = vmatpush.msra.mxu1 %v251_v3  ;;  %v481_v44 = vand.u32 4294901760, %v2772_v11  ;;  %v2798_v46 = vand.u32 4294901760, %v186_v1 }
  0xb8   :  { %352 = vmatpush.msrb.mxu0 %v4130_v38  ;;  %472 = vmatpush.msrb.mxu3 %v471_v8  ;;  %v4132_v8 = vand.u32 4294901760, %v2596_v55  ;;  %v500_v55 = vsub.f32 %v2769_v6, %v499_v35 }
  0xb9   :  { %386 = vmatpush.msrb.mxu1 %v2509_v20  ;;  %422 = vmatpush.msrb.mxu2 %v2677_v63  ;;  %v482_v3 = vsub.f32 %v2772_v11, %v481_v44  ;;  %v488_v20 = vsub.f32 %v2762_v49, %v487_v37 }
  0xba   :  { %356 = vmatpush.msrb.mxu0 %v4131_v50  ;;  %478 = vmatpush.msrb.mxu3 %v477_v19  ;;  %v501_v53 = vand.u32 4294901760, %v500_v55 }
  0xbb   :  { %388 = vmatpush.msrb.mxu1 %v2501_v17  ;;  %424 = vmatpush.msrb.mxu2 %v2652_v36  ;;  %v483_v31 = vand.u32 4294901760, %v482_v3  ;;  %v494_v17 = vsub.f32 %v2759_v21, %v493_v14  ;;  %v489_v24 = vand.u32 4294901760, %v488_v20 }
  0xbc   :  { %360 = vmatpush.msrb.mxu0 %v4132_v8  ;;  %254 = vmatmul.f32.vlgmr.msra.gmra.mxu1 %v2682_v15 }
  0xbd   :  { %390 = vmatpush.msrb.mxu1 %v2490_v12  ;;  %426 = vmatpush.msrb.mxu2 %v2755_v47  ;;  %v4134_v12 = vand.u32 4294901760, %v2640_v29  ;;  %v495_v34 = vand.u32 4294901760, %v494_v17  ;;  %v2848_v29 = vpop.permute.xlu2 %116 }
  0xbe   :  { %364 = vmatpush.msrb.mxu0 %v4133_v22  ;;  %484 = vmatpush.msrb.mxu3 %v483_v31  ;;  %v2998_v31 = vand.u32 4294901760, %v2422_v2 }
  0xbf   :  { %392 = vmatpush.msrb.mxu1 %v2545_v32  ;;  %428 = vmatpush.msrb.mxu2 %v2740_v45  ;;  %v2825_v32 = vpop.permute.xlu1 %129 }
  0xc0   :  { %368 = vmatpush.msrb.mxu0 %v243_v26  ;;  %490 = vmatpush.msrb.mxu3 %v489_v24  ;;  %v2818_v26 = vpop.permute.xlu0 %142 }
  0xc1   :  { %188 = vmatmul.f32.vlgmr.msra.gmra.mxu0 %v2798_v46  ;;  %394 = vmatpush.msrb.mxu1 %v2567_v43  ;;  %v4135_v43 = vand.u32 4294901760, %v2632_v16 }
  0xc2   :  { %372 = vmatpush.msrb.mxu0 %v4134_v12  ;;  %430 = vmatpush.msrb.mxu2 %v2720_v54 }
  0xc3   :  { %496 = vmatpush.msrb.mxu3 %v495_v34  ;;  %396 = vmatpush.msrb.mxu1 %v2590_v52  ;;  %v4136_v52 = vand.u32 4294901760, %v2646_v33 }
  0xc4   :  { %517 = vmatpush.msra.mxu0 %v2632_v16  ;;  %432 = vmatpush.msrb.mxu2 %v2731_v30  ;;  %v4137_v16 = vand.u32 4294901760, %v2657_v0 }
  0xc5   :  { %502 = vmatpush.msrb.mxu3 %v501_v53  ;;  %438 = vmatmul.f32.vlgmr.msrb.gmra.mxu2 %v2798_v46 }
  0xc6   :  { %520 = vmatpush.msra.mxu0 %v2646_v33  ;;  %590 = vmatpush.msra.mxu2 %v4135_v43 }
  0xc7   :  { %398 = vmatpush.msrb.mxu1 %v2636_v28  ;;  %636 = vmatpush.msra.mxu3 %v2606_v58  ;;  %v145_v28 = vsel %vm144_vm2, %v2559_v39, %v2818_v26 }
  0xc8   :  { %523 = vmatpush.msra.mxu0 %v2657_v0  ;;  %504 = vmatmul.f32.vlgmr.msrb.gmra.mxu3 %v2682_v15  ;;  %v2850_v33 = vpop.permute.xlu0 %103  ;;  %v4138_v0 = vand.u32 4294901760, %v2693_v13  ;;  %v2861_v39 = vand.u32 4294901760, %v145_v28 }
  0xc9   :  { %594 = vmatpush.msra.mxu2 %v4136_v52  ;;  %400 = vmatpush.msrb.mxu1 %v2684_v5  ;;  %v2869_v5 = vpop.permute.xlu1 %90  ;;  %v109_v34 = vsel %vm105_vm3, %v2850_v33, %v2530_v27 }
  0xca   :  { %638 = vmatpush.msra.mxu3 %v2616_v62  ;;  %374 = vmatmul.f32.vlgmr.msrb.gmra.mxu0 %v2682_v15 }
  0xcb   :  { %598 = vmatpush.msra.mxu2 %v4137_v16  ;;  %526 = vmatpush.msra.mxu0 %v2693_v13 }
  0xcc   :  { %402 = vmatpush.msrb.mxu1 %v2614_v61  ;;  %640 = vmatpush.msra.mxu3 %v2634_v18  ;;  %v132_v61 = vsel %vm131_vm1, %v2579_v48, %v2825_v32  ;;  %v4139_v48 = vand.u32 4294901760, %v2675_v56 }
  0xcd   :  { %404 = vmatmul.f32.vlgmr.msrb.gmra.mxu1 %v2682_v15  ;;  %529 = vmatpush.msra.mxu0 %v2675_v56  ;;  %v2874_v13 = vand.u32 4294901760, %v132_v61  ;;  %v2888_v56 = vsub.f32 %v145_v28, %v2861_v39  ;;  %v3038_v28 = vsub.f32 %v2422_v2, %v2998_v31  ;;  %v40_v2 = vld [vmem:[%s4087_s2] sm:$0xff] }
  0xce   :  { %556 = vmatpush.msra.mxu1 %v2606_v58  ;;  %602 = vmatpush.msra.mxu2 %v4138_v0  ;;  %v119_v58 = vsel %vm118_vm0, %v2611_v60, %v2848_v29 }
  0xcf   :  { %642 = vmatpush.msra.mxu3 %v2677_v63  ;;  %532 = vmatpush.msra.mxu0 %v2772_v11  ;;  %v2885_v60 = vand.u32 4294901760, %v119_v58  ;;  %v701_v11 = vand.u32 4294901760, %v2888_v56 }
  0xd0   :  { %558 = vmatpush.msra.mxu1 %v2616_v62  ;;  %606 = vmatpush.msra.mxu2 %v4139_v48  ;;  %v106_v62 = vsel %vm105_vm3, %v2663_v42, %v2850_v33  ;;  %v93_v42 = vsel %vm92_vm4, %v2604_v57, %v2869_v5  ;;  %v2915_v38 = vpop.permute.xlu0 %64 }
  0xd1   :  { %644 = vmatpush.msra.mxu3 %v2652_v36  ;;  %535 = vmatpush.msra.mxu0 %v2762_v49  ;;  %v2902_v51 = vand.u32 4294901760, %v106_v62  ;;  %v2912_v49 = vpop.permute.xlu2 %77  ;;  %v2934_v19 = vpop.permute.xlu1 %49 }
  0xd2   :  { %560 = vmatpush.msra.mxu1 %v2634_v18  ;;  %610 = vmatpush.msra.mxu2 %v481_v44  ;;  %v2896_v18 = vsub.f32 %v132_v61, %v2874_v13  ;;  %v80_v57 = vsel %vm79_vm5, %v2736_v23, %v2912_v49  ;;  %v67_v23 = vsel %vm66_vm6, %v2725_v41, %v2915_v38 }
  0xd3   :  { %646 = vmatpush.msra.mxu3 %v2755_v47  ;;  %538 = vmatpush.msra.mxu0 %v2759_v21  ;;  %v2929_v21 = vsub.f32 %v106_v62, %v2902_v51  ;;  %v702_v44 = vsub.f32 %v2888_v56, %v701_v11  ;;  %v2967_v50 = vand.u32 4294901760, %v67_v23 }
  0xd4   :  { %562 = vmatpush.msra.mxu1 %v2677_v63  ;;  %614 = vmatpush.msra.mxu2 %v487_v37  ;;  %v2910_v63 = vsub.f32 %v119_v58, %v2885_v60  ;;  %v707_v37 = vand.u32 4294901760, %v2896_v18  ;;  %v4141_v58 = vld [vmem:[#allocation10_spill] sm:$0xff] }
  0xd5   :  { %648 = vmatpush.msra.mxu3 %v2740_v45  ;;  %541 = vmatpush.msra.mxu0 %v2769_v6  ;;  %v148_v6 = vsel %vm144_vm2, %v2818_v26, %v2483_v10  ;;  %v54_v10 = vsel %vm53_vm8, %v2690_v59, %v2934_v19  ;;  %v703_v8 = vand.u32 4294901760, %v702_v44  ;;  %v3002_v17 = vsub.f32 %v67_v23, %v2967_v50  ;;  %v4140_v26 = vld [vmem:[#allocation9_spill] sm:$0xff] }
  0xd6   :  { %564 = vmatpush.msra.mxu1 %v2652_v36  ;;  %618 = vmatpush.msra.mxu2 %v493_v14  ;;  %v2923_v36 = vand.u32 4294901760, %v93_v42  ;;  %v713_v41 = vand.u32 4294901760, %v2910_v63  ;;  %v719_v14 = vand.u32 4294901760, %v2929_v21  ;;  %v2979_v3 = vand.u32 4294901760, %v148_v6 }
  0xd7   :  { %544 = vmatmul.f32.vlgmr.msra.gmra.mxu0 %v2712_v25  ;;  %650 = vmatpush.msra.mxu3 %v2720_v54  ;;  %v2993_v20 = vand.u32 4294901760, %v54_v10  ;;  %v737_v61 = vand.u32 4294901760, %v3002_v17 }
  0xd8   :  { %666 = vmatpush.msrb.mxu0 %v2861_v39  ;;  %566 = vmatpush.msra.mxu1 %v2755_v47  ;;  %v2942_v47 = vand.u32 4294901760, %v80_v57  ;;  %v2959_v1 = vsub.f32 %v93_v42, %v2923_v36  ;;  %v720_v55 = vsub.f32 %v2929_v21, %v719_v14  ;;  %v3011_v12 = vsub.f32 %v148_v6, %v2979_v3 }
  0xd9   :  { %622 = vmatpush.msra.mxu2 %v499_v35  ;;  %652 = vmatpush.msra.mxu3 %v2731_v30  ;;  %v122_v35 = vsel %vm118_vm0, %v2848_v29, %v2472_v4  ;;  %v714_v4 = vsub.f32 %v2910_v63, %v713_v41  ;;  %v3029_v27 = vsub.f32 %v54_v10, %v2993_v20  ;;  %v3040_v29 = vand.u32 4294901760, %v109_v34 }
  0xda   :  { %668 = vmatpush.msrb.mxu0 %v2874_v13  ;;  %568 = vmatpush.msra.mxu1 %v2740_v45  ;;  %v135_v45 = vsel %vm131_vm1, %v2825_v32, %v2480_v9  ;;  %v708_v9 = vsub.f32 %v2896_v18, %v707_v37  ;;  %v2984_v59 = vsub.f32 %v80_v57, %v2942_v47  ;;  %v725_v22 = vand.u32 4294901760, %v2959_v1  ;;  %v4142_v57 = vld [vmem:[#allocation11_spill] sm:$0xff] }
  0xdb   :  { %767 = vmatpush.msrb.mxu2 %v2888_v56  ;;  %806 = vmatpush.msrb.mxu3 %v2861_v39  ;;  %v3008_v24 = vand.u32 4294901760, %v122_v35  ;;  %v96_v32 = vsel %vm92_vm4, %v2869_v5, %v4140_v26  ;;  %v715_v43 = vand.u32 4294901760, %v714_v4  ;;  %v721_v33 = vand.u32 4294901760, %v720_v55  ;;  %v4143_v55 = vld [vmem:[#allocation12_spill] sm:$0xff] }
  0xdc   :  { %624 = vmatmul.f32.vlgmr.msra.gmra.mxu2 %v2682_v15  ;;  %670 = vmatpush.msrb.mxu0 %v2885_v60  ;;  %v731_v52 = vand.u32 4294901760, %v2984_v59  ;;  %v726_v16 = vsub.f32 %v2959_v1, %v725_v22  ;;  %v83_v5 = vsel %vm79_vm5, %v2912_v49, %v4141_v58  ;;  %v951_v48 = vand.u32 4294901760, %v3011_v12 }
  0xdd   :  { %770 = vmatpush.msrb.mxu2 %v2896_v18  ;;  %570 = vmatpush.msra.mxu1 %v2720_v54  ;;  %v2986_v54 = vand.u32 4294901760, %v135_v45  ;;  %v3045_v0 = vsub.f32 %v122_v35, %v3008_v24  ;;  %v3057_v62 = vand.u32 4294901760, %v96_v32  ;;  %v70_v23 = vsel %vm66_vm6, %v2915_v38, %v4142_v57 }
  0xde   :  { %808 = vmatpush.msrb.mxu3 %v2874_v13  ;;  %672 = vmatpush.msrb.mxu0 %v2902_v51  ;;  %v732_v42 = vsub.f32 %v2984_v59, %v731_v52  ;;  %v2365_v6 = vmov 0   ;;  %v727_v44 = vand.u32 4294901760, %v726_v16  ;;  %v749_v10 = vand.u32 4294901760, %v3038_v28 }
  0xdf   :  { %654 = vmatmul.f32.vlgmr.msra.gmra.mxu3 %v2682_v15  ;;  %773 = vmatpush.msrb.mxu2 %v2910_v63  ;;  %v3020_v53 = vsub.f32 %v135_v45, %v2986_v54  ;;  %v743_v45 = vand.u32 4294901760, %v3029_v27  ;;  %v3075_v35 = vsub.f32 %v109_v34, %v3040_v29  ;;  %v738_v38 = vsub.f32 %v3002_v17, %v737_v61 }
  0xe0   :  { %572 = vmatpush.msra.mxu1 %v2731_v30  ;;  %810 = vmatpush.msrb.mxu3 %v2885_v60  ;;  %v709_v30 = vand.u32 4294901760, %v708_v9  ;;  %v3072_v9 = vand.u32 4294901760, %v83_v5  ;;  %v963_v4 = vand.u32 4294901760, %v3045_v0  ;;  %v57_v34 = vsel %vm53_vm8, %v2934_v19, %v4143_v55 }
  0xe1   :  { %576 = vmatmul.f32.vlgmr.msra.gmra.mxu1 %v2753_v40  ;;  %674 = vmatpush.msrb.mxu0 %v2923_v36  ;;  %v957_v49 = vand.u32 4294901760, %v3020_v53  ;;  %v3093_v26 = vand.u32 4294901760, %v70_v23  ;;  %v750_v16 = vsub.f32 %v3038_v28, %v749_v10  ;;  %v739_v56 = vand.u32 4294901760, %v738_v38 }
  0xe2   :  { %704 = vmatpush.msrb.mxu1 %v703_v8  ;;  %776 = vmatpush.msrb.mxu2 %v2929_v21  ;;  %v952_v8 = vsub.f32 %v3011_v12, %v951_v48  ;;  %v3114_v58 = vand.u32 4294901760, %v57_v34 }
  0xe3   :  { %812 = vmatpush.msrb.mxu3 %v2902_v51  ;;  %676 = vmatpush.msrb.mxu0 %v2942_v47  ;;  %v958_v19 = vsub.f32 %v3020_v53, %v957_v49 }
  0xe4   :  { %710 = vmatpush.msrb.mxu1 %v709_v30  ;;  %779 = vmatpush.msrb.mxu2 %v2959_v1  ;;  %v3087_v30 = vsub.f32 %v96_v32, %v3057_v62  ;;  %v744_v32 = vsub.f32 %v3029_v27, %v743_v45 }
  0xe5   :  { %814 = vmatpush.msrb.mxu3 %v2923_v36  ;;  %678 = vmatpush.msrb.mxu0 %v2967_v50 }
  0xe6   :  { %716 = vmatpush.msrb.mxu1 %v715_v43  ;;  %782 = vmatpush.msrb.mxu2 %v2984_v59  ;;  %v733_v43 = vand.u32 4294901760, %v732_v42  ;;  %v4144_v42 = vld [vmem:[#allocation8_spill] sm:$0xff]  ;;  %v975_v38 = vand.u32 4294901760, %v3087_v30  ;;  %v745_v18 = vand.u32 4294901760, %v744_v32 }
  0xe7   :  { %816 = vmatpush.msrb.mxu3 %v2942_v47  ;;  %680 = vmatpush.msrb.mxu0 %v2993_v20  ;;  %v3120_v57 = vand.u32 4294901760, %v4144_v42 }
  0xe8   :  { %722 = vmatpush.msrb.mxu1 %v721_v33  ;;  %785 = vmatpush.msrb.mxu2 %v3002_v17  ;;  %v3110_v33 = vsub.f32 %v83_v5, %v3072_v9  ;;  %v3123_v5 = vsub.f32 %v70_v23, %v3093_v26 }
  0xe9   :  { %2302 = vset.pattern.permute.xlu2 %v2365_v6  ;;  %818 = vmatpush.msrb.mxu3 %v2967_v50  ;;  %v3143_v32 = vsub.f32 %v4144_v42, %v3120_v57 }
  0xea   :  { %151 = vperm.xlu2 %2302, %v40_v2   ;;  %682 = vmatpush.msrb.mxu0 %v2998_v31  ;;  %v953_v2 = vand.u32 4294901760, %v952_v8  ;;  %v751_v8 = vand.u32 4294901760, %v750_v16  ;;  %v981_v55 = vand.u32 4294901760, %v3110_v33 }
  0xeb   :  { %728 = vmatpush.msrb.mxu1 %v727_v44  ;;  %788 = vmatpush.msrb.mxu2 %v3029_v27  ;;  %v964_v44 = vsub.f32 %v3045_v0, %v963_v4 }
  0xec   :  { %688 = vmatmul.f32.vlgmr.msrb.gmra.mxu0 %v2798_v46  ;;  %820 = vmatpush.msrb.mxu3 %v2993_v20  ;;  %v982_v16 = vsub.f32 %v3110_v33, %v981_v55 }
  0xed   :  { %840 = vmatpush.msra.mxu0 %v701_v11  ;;  %734 = vmatpush.msrb.mxu1 %v733_v43  ;;  %v969_v11 = vand.u32 4294901760, %v3075_v35  ;;  %v3139_v43 = vsub.f32 %v57_v34, %v3114_v58  ;;  %v965_v63 = vand.u32 4294901760, %v964_v44 }
  0xee   :  { %791 = vmatpush.msrb.mxu2 %v3038_v28  ;;  %822 = vmatpush.msrb.mxu3 %v2998_v31 }
  0xef   :  { %844 = vmatpush.msra.mxu0 %v707_v37  ;;  %740 = vmatpush.msrb.mxu1 %v739_v56  ;;  %v959_v37 = vand.u32 4294901760, %v958_v19  ;;  %v970_v23 = vsub.f32 %v3075_v35, %v969_v11  ;;  %v987_v19 = vand.u32 4294901760, %v3123_v5  ;;  %v993_v21 = vand.u32 4294901760, %v3139_v43 }
  0xf0   :  { %916 = vmatpush.msra.mxu2 %v2979_v3  ;;  %954 = vmatpush.msra.mxu3 %v953_v2 }
  0xf1   :  { %794 = vmatmul.f32.vlgmr.msrb.gmra.mxu2 %v2712_v25  ;;  %848 = vmatpush.msra.mxu0 %v713_v41  ;;  %v976_v41 = vsub.f32 %v3087_v30, %v975_v38  ;;  %v971_v34 = vand.u32 4294901760, %v970_v23  ;;  %v988_v2 = vsub.f32 %v3123_v5, %v987_v19  ;;  %v994_v1 = vsub.f32 %v3139_v43, %v993_v21 }
  0xf2   :  { %918 = vmatpush.msra.mxu2 %v2986_v54  ;;  %746 = vmatpush.msrb.mxu1 %v745_v18 }
  0xf3   :  { %960 = vmatpush.msra.mxu3 %v959_v37  ;;  %852 = vmatpush.msra.mxu0 %v719_v14  ;;  %v999_v14 = vand.u32 4294901760, %v3143_v32  ;;  %v977_v56 = vand.u32 4294901760, %v976_v41 }
  0xf4   :  { %826 = vmatmul.f32.vlgmr.msrb.gmra.mxu3 %v2753_v40  ;;  %920 = vmatpush.msra.mxu2 %v3008_v24 }
  0xf5   :  { %752 = vmatpush.msrb.mxu1 %v751_v8  ;;  %966 = vmatpush.msra.mxu3 %v965_v63  ;;  %v1000_v59 = vsub.f32 %v3143_v32, %v999_v14 }
  0xf6   :  { %754 = vmatmul.f32.vlgmr.msrb.gmra.mxu1 %v2682_v15  ;;  %856 = vmatpush.msra.mxu0 %v725_v22 }
  0xf7   :  { %886 = vmatpush.msra.mxu1 %v2861_v39  ;;  %922 = vmatpush.msra.mxu2 %v3040_v29  ;;  %v983_v39 = vand.u32 4294901760, %v982_v16  ;;  %v1001_v22 = vand.u32 4294901760, %v1000_v59 }
  0xf8   :  { %972 = vmatpush.msra.mxu3 %v971_v34  ;;  %860 = vmatpush.msra.mxu0 %v731_v52 }
  0xf9   :  { %888 = vmatpush.msra.mxu1 %v2874_v13  ;;  %924 = vmatpush.msra.mxu2 %v3057_v62  ;;  %v989_v13 = vand.u32 4294901760, %v988_v2 }
  0xfa   :  { %978 = vmatpush.msra.mxu3 %v977_v56  ;;  %864 = vmatpush.msra.mxu0 %v737_v61 }
  0xfb   :  { %890 = vmatpush.msra.mxu1 %v2885_v60  ;;  %926 = vmatpush.msra.mxu2 %v3072_v9  ;;  %v995_v60 = vand.u32 4294901760, %v994_v1 }
  0xfc   :  { %984 = vmatpush.msra.mxu3 %v983_v39  ;;  %868 = vmatpush.msra.mxu0 %v743_v45 }
  0xfd   :  { %892 = vmatpush.msra.mxu1 %v2902_v51  ;;  %928 = vmatpush.msra.mxu2 %v3093_v26 }
  0xfe   :  { %990 = vmatpush.msra.mxu3 %v989_v13  ;;  %872 = vmatpush.msra.mxu0 %v749_v10 }
  0xff   :  { %894 = vmatpush.msra.mxu1 %v2923_v36  ;;  %930 = vmatpush.msra.mxu2 %v3114_v58 }
 0x100   :  { %874 = vmatmul.f32.vlgmr.msra.gmra.mxu0 %v2682_v15  ;;  %996 = vmatpush.msra.mxu3 %v995_v60 }
 0x101   :  { %1017 = vmatpush.msrb.mxu0 %v3011_v12  ;;  %896 = vmatpush.msra.mxu1 %v2942_v47 }
 0x102   :  { %932 = vmatpush.msra.mxu2 %v3120_v57  ;;  %1002 = vmatpush.msra.mxu3 %v1001_v22 }
 0x103   :  { %938 = vmatmul.f32.vlgmr.msra.gmra.mxu2 %v2798_v46  ;;  %1020 = vmatpush.msrb.mxu0 %v3020_v53 }
 0x104   :  { %1090 = vmatpush.msrb.mxu2 %v951_v48  ;;  %898 = vmatpush.msra.mxu1 %v2967_v50 }
 0x105   :  { %1136 = vmatpush.msrb.mxu3 %v2979_v3  ;;  %1023 = vmatpush.msrb.mxu0 %v3045_v0 }
 0x106   :  { %1004 = vmatmul.f32.vlgmr.msra.gmra.mxu3 %v2682_v15  ;;  %1094 = vmatpush.msrb.mxu2 %v957_v49 }
 0x107   :  { %900 = vmatpush.msra.mxu1 %v2993_v20  ;;  %1138 = vmatpush.msrb.mxu3 %v2986_v54 }
 0x108   :  { %1026 = vmatpush.msrb.mxu0 %v3075_v35  ;;  %1098 = vmatpush.msrb.mxu2 %v963_v4 }
 0x109   :  { %902 = vmatpush.msra.mxu1 %v2998_v31  ;;  %1140 = vmatpush.msrb.mxu3 %v3008_v24 }
 0x10a   :  { %904 = vmatmul.f32.vlgmr.msra.gmra.mxu1 %v2682_v15  ;;  %1029 = vmatpush.msrb.mxu0 %v3087_v30 }
 0x10b   :  { %1056 = vmatpush.msrb.mxu1 %v2979_v3  ;;  %1102 = vmatpush.msrb.mxu2 %v969_v11 }
 0x10c   :  { %1142 = vmatpush.msrb.mxu3 %v3040_v29  ;;  %1032 = vmatpush.msrb.mxu0 %v3110_v33 }
 0x10d   :  { %1058 = vmatpush.msrb.mxu1 %v2986_v54  ;;  %1106 = vmatpush.msrb.mxu2 %v975_v38 }
 0x10e   :  { %1144 = vmatpush.msrb.mxu3 %v3057_v62  ;;  %1035 = vmatpush.msrb.mxu0 %v3123_v5 }
 0x10f   :  { %1060 = vmatpush.msrb.mxu1 %v3008_v24  ;;  %1110 = vmatpush.msrb.mxu2 %v981_v55 }
 0x110   :  { %1146 = vmatpush.msrb.mxu3 %v3072_v9  ;;  %1038 = vmatpush.msrb.mxu0 %v3139_v43 }
 0x111   :  { %1062 = vmatpush.msrb.mxu1 %v3040_v29  ;;  %1114 = vmatpush.msrb.mxu2 %v987_v19 }
 0x112   :  { %1148 = vmatpush.msrb.mxu3 %v3093_v26  ;;  %1041 = vmatpush.msrb.mxu0 %v3143_v32 }
 0x113   :  { %1064 = vmatpush.msrb.mxu1 %v3057_v62  ;;  %1118 = vmatpush.msrb.mxu2 %v993_v21 }
 0x114   :  { %1044 = vmatmul.f32.vlgmr.msrb.gmra.mxu0 %v2712_v25  ;;  %1150 = vmatpush.msrb.mxu3 %v3114_v58 }
 0x115   :  { %1066 = vmatpush.msrb.mxu1 %v3072_v9  ;;  %1122 = vmatpush.msrb.mxu2 %v999_v14  ;;  %v42_v14 = vld [vmem:[%s4089_s4] sm:$0xff] }
 0x116   :  { %2303 = vset.pattern.permute.xlu0 %v2365_v6  ;;  %1124 = vmatmul.f32.vlgmr.msrb.gmra.mxu2 %v2682_v15 }
 0x117   :  { %1068 = vmatpush.msrb.mxu1 %v3093_v26  ;;  %1152 = vmatpush.msrb.mxu3 %v3120_v57 }
 0x118   :  { %1154 = vmatmul.f32.vlgmr.msrb.gmra.mxu3 %v2682_v15 }
 0x119   :  { %1070 = vmatpush.msrb.mxu1 %v3114_v58 }
 0x11b   :  { %1072 = vmatpush.msrb.mxu1 %v3120_v57 }
 0x11c   :  { %1076 = vmatmul.f32.vlgmr.msrb.gmra.mxu1 %v2753_v40 }
 0x135   :  { %v295_v50 = vpop.f32.mrf.mxu2 }
 0x136   :  { %v327_v54 = vpop.f32.mrf.mxu3 }
 0x139   :  { %v255_v46 = vpop.f32.mrf.mxu1 }
 0x13e   :  { %v189_v25 = vpop.f32.mrf.mxu0 }
 0x144   :  { %v152_v51 = vpop.permute.xlu2 %151 }
 0x145   :  { %v190_v36 = vadd.f32 %v189_v25, %v152_v51 }
 0x147   :  { %v256_v47 = vadd.f32 %v255_v46, %v190_v36  ;;  %v375_v20 = vpop.f32.mrf.mxu0 }
 0x148   :  { %v439_v15 = vpop.f32.mrf.mxu2 }
 0x149   :  { %v296_v3 = vadd.f32 %v295_v50, %v256_v47  ;;  %v440_v40 = vadd.f32 %v439_v15, %v152_v51 }
 0x14a   :  { %v405_v17 = vpop.f32.mrf.mxu1 }
 0x14b   :  { %v328_v31 = vadd.f32 %v327_v54, %v296_v3  ;;  %v505_v52 = vpop.f32.mrf.mxu3 }
 0x14c   :  { %v506_v28 = vadd.f32 %v505_v52, %v440_v40 }
 0x14d   :  { %v376_v24 = vadd.f32 %v375_v20, %v328_v31 }
 0x14f   :  { %v406_v12 = vadd.f32 %v405_v17, %v376_v24 }
 0x151   :  { %v3247_v53 = vmax.f32 %v406_v12, 0.0 }
 0x153   :  { %1222 = vrot.lane.b32.xlu1 %v3247_v53, %s2357_s23  ;;  %1246 = vrot.lane.b32.xlu0 %v3247_v53, %s2359_s25 }
 0x154   :  { %1234 = vrot.lane.b32.xlu2 %v3247_v53, %s2358_s24  ;;  %v545_v27 = vpop.f32.mrf.mxu0 }
 0x155   :  { %v546_v29 = vadd.f32 %v545_v27, %v506_v28  ;;  %v41_v28 = vld [vmem:[%s4088_s3] sm:$0xff]  ;;  %s2366_s3 = smov [#allocation5]  }
 0x156   :  { %s2279_s10 = sshll.u32 %s2366_s3, 4  ;;  %s2280_s10 = int_to_ptr.vmem [resolvable:$true] %s2279_s10 }
 0x15b   :  { %1210 = vrot.lane.b32.xlu0 %v3247_v53, %s2361_s26 }
 0x15e   :  { %v577_v61 = vpop.f32.mrf.mxu1 }
 0x15f   :  { %v578_v0 = vadd.f32 %v577_v61, %v546_v29  ;;  %v625_v48 = vpop.f32.mrf.mxu2 }
 0x161   :  { %v626_v62 = vadd.f32 %v625_v48, %v578_v0 }
 0x162   :  { %v655_v49 = vpop.f32.mrf.mxu3 }
 0x163   :  { %v656_v6 = vadd.f32 %v655_v49, %v626_v62  ;;  %1198 = vrot.lane.b32.xlu0 %v3247_v53, %s2360_s0  ;;  %v1264_v62 = vsel %vm154_vm7, %v41_v28, 0  ;;  %v3486_v28 = vand.u32 4294901760, %v3247_v53 }
 0x165   :  { %v3259_v45 = vmax.f32 %v656_v6, 0.0 }
 0x167   :  { %1248 = vrot.lane.b32.xlu1 %v3259_v45, %s2359_s25  ;;  %1224 = vrot.lane.b32.xlu2 %v3259_v45, %s2357_s23 }
 0x169   :  { %v689_v10 = vpop.f32.mrf.mxu0 }
 0x16a   :  { %v690_v35 = vadd.f32 %v689_v10, %v152_v51 }
 0x16b   :  { %1186 = vrot.lane.b32.xlu0 %v3247_v53, %s2362_s27 }
 0x16f   :  { %1212 = vrot.lane.b32.xlu1 %v3259_v45, %s2361_s26 }
 0x173   :  { %1174 = vrot.lane.b32.xlu0 %v3247_v53, %s2363_s28  ;;  %v755_v9 = vpop.f32.mrf.mxu1 }
 0x174   :  { %v756_v4 = vadd.f32 %v755_v9, %v690_v35  ;;  %v795_v30 = vpop.f32.mrf.mxu2 }
 0x176   :  { %v796_v26 = vadd.f32 %v795_v30, %v756_v4 }
 0x177   :  { %1200 = vrot.lane.b32.xlu1 %v3259_v45, %s2360_s0  ;;  %v827_v33 = vpop.f32.mrf.mxu3 }
 0x178   :  { %v828_v58 = vadd.f32 %v827_v33, %v796_v26 }
 0x17b   :  { %1236 = vrot.lane.b32.xlu0 %v3259_v45, %s2358_s24 }
 0x17d   :  { %v875_v11 = vpop.f32.mrf.mxu0 }
 0x17e   :  { %v876_v42 = vadd.f32 %v875_v11, %v828_v58  ;;  %v3415_v11 = vand.u32 4294901760, %v1264_v62 }
 0x17f   :  { %1188 = vrot.lane.b32.xlu1 %v3259_v45, %s2362_s27 }
 0x183   :  { %1162 = vrot.lane.b32.xlu0 %v3247_v53, %s2364_s29 }
 0x186   :  { %v939_v38 = vpop.f32.mrf.mxu2 }
 0x187   :  { %v905_v57 = vpop.f32.mrf.mxu1  ;;  %1176 = vrot.lane.b32.xlu1 %v3259_v45, %s2363_s28  ;;  %v940_v18 = vadd.f32 %v939_v38, %v152_v51 }
 0x188   :  { %v906_v5 = vadd.f32 %v905_v57, %v876_v42 }
 0x189   :  { %v1005_v37 = vpop.f32.mrf.mxu3 }
 0x18a   :  { %v3281_v44 = vmax.f32 %v906_v5, 0.0  ;;  %v1006_v23 = vadd.f32 %v1005_v37, %v940_v18 }
 0x18c   :  { %1250 = vrot.lane.b32.xlu2 %v3281_v44, %s2359_s25  ;;  %1190 = vrot.lane.b32.xlu0 %v3281_v44, %s2362_s27 }
 0x18f   :  { %1164 = vrot.lane.b32.xlu1 %v3259_v45, %s2364_s29 }
 0x191   :  { %v1045_v8 = vpop.f32.mrf.mxu0 }
 0x192   :  { %v1046_v55 = vadd.f32 %v1045_v8, %v1006_v23 }
 0x194   :  { %1238 = vrot.lane.b32.xlu2 %v3281_v44, %s2358_s24 }
 0x197   :  { %1178 = vrot.lane.b32.xlu1 %v3281_v44, %s2363_s28 }
 0x199   :  { %v1077_v43 = vpop.f32.mrf.mxu1  ;;  %v1125_v63 = vpop.f32.mrf.mxu2 }
 0x19a   :  { %v1078_v32 = vadd.f32 %v1077_v43, %v1046_v55 }
 0x19b   :  { %v1155_v19 = vpop.f32.mrf.mxu3 }
 0x19c   :  { %v1126_v41 = vadd.f32 %v1125_v63, %v1078_v32  ;;  %1226 = vrot.lane.b32.xlu2 %v3281_v44, %s2357_s23  ;;  %v3447_v32 = vsub.f32 %v1264_v62, %v3415_v11 }
 0x19e   :  { %v1156_v34 = vadd.f32 %v1155_v19, %v1126_v41 }
 0x1a0   :  { %v3295_v16 = vmax.f32 %v1156_v34, 0.0 }
 0x1a2   :  { %4145 = vst [vmem:[#allocation9_spill] sm:$0xff] %v3295_v16  ;;  %1252 = vrot.lane.b32.xlu0 %v3295_v16, %s2359_s25  ;;  %1240 = vrot.lane.b32.xlu1 %v3295_v16, %s2358_s24 }
 0x1a4   :  { %1214 = vrot.lane.b32.xlu2 %v3281_v44, %s2361_s26 }
 0x1aa   :  { %1216 = vrot.lane.b32.xlu0 %v3295_v16, %s2361_s26  ;;  %1204 = vrot.lane.b32.xlu1 %v3295_v16, %s2360_s0 }
 0x1ac   :  { %1202 = vrot.lane.b32.xlu2 %v3281_v44, %s2360_s0 }
 0x1ae   :  { %v3330_v1 = vpop.permute.xlu2 %1234 }
 0x1b2   :  { %1180 = vrot.lane.b32.xlu0 %v3295_v16, %s2363_s28  ;;  %1168 = vrot.lane.b32.xlu1 %v3295_v16, %s2364_s29 }
 0x1b4   :  { %1166 = vrot.lane.b32.xlu2 %v3281_v44, %s2364_s29 }
 0x1bc   :  { %1228 = vrot.lane.b32.xlu2 %v3295_v16, %s2357_s23 }
 0x1c1   :  { %v1225_v46 = vpop.permute.xlu2 %1224 }
 0x1c4   :  { %1192 = vrot.lane.b32.xlu2 %v3295_v16, %s2362_s27 }
 0x1c5   :  { %v3319_v21 = vpop.permute.xlu0 %1246  ;;  %v3326_v2 = vpop.permute.xlu1 %1222 }
 0x1c6   :  { %v1232_v54 = vsel %vm118_vm0, %v3326_v2, %v1225_v46 }
 0x1c7   :  { %v3362_v17 = vand.u32 4294901760, %v1232_v54 }
 0x1c9   :  { %v3373_v40 = vsub.f32 %v1232_v54, %v3362_v17 }
 0x1cb   :  { %v4112_v9 = vand.u32 4294901760, %v3373_v40 }
 0x1cc   :  { %1260 = vperm.xlu2 %2302, %v42_v14  }
 0x1cd   :  { %v3324_v56 = vpop.permute.xlu0 %1210  ;;  %v1322_v5 = vsub.f32 %v3373_v40, %v4112_v9 }
 0x1cf   :  { %v1323_v19 = vand.u32 4294901760, %v1322_v5 }
 0x1d5   :  { %v3328_v39 = vpop.permute.xlu0 %1198 }
 0x1d9   :  { %v1249_v59 = vpop.permute.xlu1 %1248 }
 0x1da   :  { %v1256_v13 = vsel %vm144_vm2, %v3319_v21, %v1249_v59 }
 0x1db   :  { %v3335_v60 = vand.u32 4294901760, %v1256_v13 }
 0x1dd   :  { %v3338_v22 = vsub.f32 %v1256_v13, %v3335_v60  ;;  %v3340_v25 = vpop.permute.xlu0 %1186  ;;  %1274 = vmatpush.msra.mxu0 %v3335_v60  ;;  %1414 = vmatpush.msra.mxu3 %v3335_v60 }
 0x1df   :  { %v1309_v51 = vand.u32 4294901760, %v3338_v22  ;;  %1375 = vmatpush.msra.mxu2 %v3338_v22 }
 0x1e1   :  { %v1310_v36 = vsub.f32 %v3338_v22, %v1309_v51  ;;  %v3349_v47 = vpop.permute.xlu1 %1212 }
 0x1e2   :  { %v1220_v31 = vsel %vm105_vm3, %v3324_v56, %v3349_v47 }
 0x1e3   :  { %v1311_v50 = vand.u32 4294901760, %v1310_v36  ;;  %v3370_v15 = vand.u32 4294901760, %v1220_v31 }
 0x1e5   :  { %v3351_v3 = vpop.permute.xlu0 %1174  ;;  %1312 = vmatpush.msra.mxu1 %v1311_v50  ;;  %v3386_v0 = vsub.f32 %v1220_v31, %v3370_v15  ;;  %v3479_v31 = vand.u32 4294901760, %v3447_v32 }
 0x1e6   :  { %4146 = vst [vmem:[#allocation10_spill] sm:$0xff] %v3351_v3  ;;  %v3356_v20 = vpop.permute.xlu2 %1250 }
 0x1e7   :  { %v1255_v4 = vsel %vm144_vm2, %v1249_v59, %v3356_v20  ;;  %v4111_v33 = vand.u32 4294901760, %v3386_v0 }
 0x1e8   :  { %v3432_v18 = vand.u32 4294901760, %v1255_v4 }
 0x1e9   :  { %v3364_v24 = vpop.permute.xlu1 %1200  ;;  %v1328_v55 = vsub.f32 %v3386_v0, %v4111_v33 }
 0x1ea   :  { %v1208_v12 = vsel %vm92_vm4, %v3328_v39, %v3364_v24  ;;  %v3468_v13 = vsub.f32 %v1255_v4, %v3432_v18 }
 0x1eb   :  { %v3375_v52 = vand.u32 4294901760, %v1208_v12  ;;  %v1329_v36 = vand.u32 4294901760, %v1328_v55 }
 0x1ec   :  { %v4113_v4 = vand.u32 4294901760, %v3468_v13 }
 0x1ed   :  { %v1237_v27 = vpop.permute.xlu0 %1236  ;;  %v3392_v49 = vsub.f32 %v1208_v12, %v3375_v52 }
 0x1ee   :  { %v3380_v29 = vpop.permute.xlu2 %1238  ;;  %v1244_v61 = vsel %vm131_vm1, %v3330_v1, %v1237_v27 }
 0x1ef   :  { %v3388_v48 = vand.u32 4294901760, %v1244_v61  ;;  %v4110_v38 = vand.u32 4294901760, %v3392_v49  ;;  %v1243_v8 = vsel %vm131_vm1, %v1237_v27, %v3380_v29 }
 0x1f0   :  { %v3459_v14 = vand.u32 4294901760, %v1243_v8 }
 0x1f1   :  { %v3395_v6 = vsub.f32 %v1244_v61, %v3388_v48  ;;  %1276 = vmatpush.msra.mxu0 %v3388_v48  ;;  %1416 = vmatpush.msra.mxu3 %v3388_v48  ;;  %v3399_v10 = vpop.permute.xlu1 %1188  ;;  %v1334_v34 = vsub.f32 %v3392_v49, %v4110_v38 }
 0x1f2   :  { %v1196_v35 = vsel %vm79_vm5, %v3340_v25, %v3399_v10  ;;  %v3489_v61 = vsub.f32 %v1243_v8, %v3459_v14 }
 0x1f3   :  { %v3409_v30 = vand.u32 4294901760, %v1196_v35  ;;  %1278 = vmatpush.msra.mxu0 %v3362_v17  ;;  %1378 = vmatpush.msra.mxu2 %v3395_v6  ;;  %v4114_v26 = vand.u32 4294901760, %v3395_v6  ;;  %v1335_v27 = vand.u32 4294901760, %v1334_v34  ;;  %v1294_v34 = vsub.f32 %v3447_v32, %v3479_v31 }
 0x1f4   :  { %1418 = vmatpush.msra.mxu3 %v3362_v17 }
 0x1f5   :  { %v3419_v58 = vsub.f32 %v1196_v35, %v3409_v30  ;;  %1280 = vmatpush.msra.mxu0 %v3370_v15  ;;  %1381 = vmatpush.msra.mxu2 %v3373_v40  ;;  %v3423_v42 = vpop.permute.xlu0 %1162  ;;  %v1316_v57 = vsub.f32 %v3395_v6, %v4114_v26 }
 0x1f6   :  { %4147 = vst [vmem:[#allocation11_spill] sm:$0xff] %v3423_v42  ;;  %v3434_v37 = vpop.permute.xlu2 %1226  ;;  %1420 = vmatpush.msra.mxu3 %v3370_v15 }
 0x1f7   :  { %1282 = vmatpush.msra.mxu0 %v3375_v52  ;;  %1384 = vmatpush.msra.mxu2 %v3386_v0  ;;  %v1317_v23 = vand.u32 4294901760, %v1316_v57  ;;  %v4109_v43 = vand.u32 4294901760, %v3419_v58  ;;  %v1231_v63 = vsel %vm118_vm0, %v1225_v46, %v3434_v37 }
 0x1f8   :  { %1422 = vmatpush.msra.mxu3 %v3375_v52  ;;  %v3475_v54 = vand.u32 4294901760, %v1231_v63 }
 0x1f9   :  { %1284 = vmatpush.msra.mxu0 %v3409_v30  ;;  %1318 = vmatpush.msra.mxu1 %v1317_v23  ;;  %v3454_v41 = vpop.permute.xlu1 %1176  ;;  %v1340_v50 = vsub.f32 %v3419_v58, %v4109_v43 }
 0x1fa   :  { %1387 = vmatpush.msra.mxu2 %v3392_v49  ;;  %1424 = vmatpush.msra.mxu3 %v3409_v30  ;;  %v1184_v59 = vsel %vm66_vm6, %v3351_v3, %v3454_v41  ;;  %v3504_v23 = vsub.f32 %v1231_v63, %v3475_v54  ;;  %v3519_v63 = vsub.f32 %v3247_v53, %v3486_v28  ;;  %v3535_v53 = vand.u32 4294901760, %v1294_v34 }
 0x1fb   :  { %v3470_v46 = vand.u32 4294901760, %v1184_v59  ;;  %1324 = vmatpush.msra.mxu1 %v1323_v19  ;;  %v1341_v5 = vand.u32 4294901760, %v1340_v50  ;;  %v4115_v50 = vand.u32 4294901760, %v3489_v61 }
 0x1fc   :  { %1390 = vmatpush.msra.mxu2 %v3419_v58 }
 0x1fd   :  { %v3482_v12 = vsub.f32 %v1184_v59, %v3470_v46  ;;  %1330 = vmatpush.msra.mxu1 %v1329_v36  ;;  %1286 = vmatpush.msra.mxu0 %v3470_v46 }
 0x1fe   :  { %v3491_v62 = vpop.permute.xlu2 %1214  ;;  %v3493_v35 = vpop.permute.xlu0 %1190  ;;  %1426 = vmatpush.msra.mxu3 %v3470_v46 }
 0x1ff   :  { %v1219_v57 = vsel %vm105_vm3, %v3349_v47, %v3491_v62  ;;  %1336 = vmatpush.msra.mxu1 %v1335_v27  ;;  %1393 = vmatpush.msra.mxu2 %v3482_v12  ;;  %v4108_v8 = vand.u32 4294901760, %v3482_v12  ;;  %v1195_v19 = vsel %vm79_vm5, %v3399_v10, %v3493_v35  ;;  %v1560_v27 = vsub.f32 %v3468_v13, %v4113_v4 }
 0x200   :  { %v3506_v55 = vand.u32 4294901760, %v1219_v57 }
 0x201   :  { %1342 = vmatpush.msra.mxu1 %v1341_v5  ;;  %v1165_v47 = vpop.permute.xlu1 %1164  ;;  %v1346_v59 = vsub.f32 %v3482_v12, %v4108_v8  ;;  %v3531_v5 = vand.u32 4294901760, %v1195_v19 }
 0x202   :  { %v3522_v36 = vsub.f32 %v1219_v57, %v3506_v55  ;;  %v1172_v10 = vsel %vm53_vm8, %v3423_v42, %v1165_v47  ;;  %v4118_v57 = vand.u32 4294901760, %v3504_v23 }
 0x203   :  { %v3533_v8 = vand.u32 4294901760, %v1172_v10  ;;  %v1347_v43 = vand.u32 4294901760, %v1346_v59  ;;  %v1566_v59 = vsub.f32 %v3489_v61, %v4115_v50  ;;  %v3551_v4 = vsub.f32 %v1195_v19, %v3531_v5 }
 0x204   :  { %v1572_v19 = vsub.f32 %v3504_v23, %v4118_v57  ;;  %v4148_v50 = vand.u32 4294901760, %v3519_v63 }
 0x205   :  { %v3539_v38 = vsub.f32 %v1172_v10, %v3533_v8  ;;  %1288 = vmatpush.msra.mxu0 %v3533_v8  ;;  %1348 = vmatpush.msra.mxu1 %v1347_v43  ;;  %v1561_v10 = vand.u32 4294901760, %v1560_v27 }
 0x206   :  { %v3543_v9 = vpop.permute.xlu2 %1202  ;;  %1428 = vmatpush.msra.mxu3 %v3533_v8  ;;  %v1358_v34 = vsub.f32 %v3519_v63, %v4148_v50  ;;  %v4150_v50 = vand.u32 4294901760, %v3395_v6  ;;  %v4151_v6 = vand.u32 4294901760, %v3373_v40  ;;  %v4153_v40 = vand.u32 4294901760, %v3551_v4 }
 0x207   :  { %v1207_v43 = vsel %vm92_vm4, %v3364_v24, %v3543_v9  ;;  %1290 = vmatpush.msra.mxu0 %v3486_v28  ;;  %1396 = vmatpush.msra.mxu2 %v3539_v38  ;;  %v4119_v26 = vand.u32 4294901760, %v3539_v38 }
 0x208   :  { %v3560_v33 = vand.u32 4294901760, %v1207_v43  ;;  %1430 = vmatpush.msra.mxu3 %v3486_v28  ;;  %1296 = vmatmul.f32.vlgmr.msra.gmra.mxu0 %v3535_v53  ;;  %v1359_v42 = vand.u32 4294901760, %v1358_v34 }
 0x209   :  { %1448 = vmatpush.msrb.mxu0 %v1309_v51  ;;  %v3569_v24 = vpop.permute.xlu1 %1178  ;;  %v1352_v27 = vsub.f32 %v3539_v38, %v4119_v26  ;;  %1399 = vmatpush.msra.mxu2 %v3519_v63  ;;  %v1567_v51 = vand.u32 4294901760, %v1566_v59  ;;  %v1573_v59 = vand.u32 4294901760, %v1572_v19 }
 0x20a   :  { %1562 = vmatpush.msrb.mxu3 %v1561_v10  ;;  %v3578_v16 = vsub.f32 %v1207_v43, %v3560_v33  ;;  %v1183_v22 = vsel %vm66_vm6, %v3454_v41, %v3569_v24  ;;  %v4149_v10 = vand.u32 4294901760, %v3522_v36  ;;  %v3596_v41 = vand.u32 4294901760, %v3259_v45  ;;  %1402 = vmatmul.f32.vlgmr.msra.gmra.mxu2 %v3447_v32 }
 0x20b   :  { %1434 = vmatmul.f32.vlgmr.msra.gmra.mxu3 %v3479_v31  ;;  %v3589_v26 = vand.u32 4294901760, %v1183_v22  ;;  %1452 = vmatpush.msrb.mxu0 %v4150_v50  ;;  %v1353_v43 = vand.u32 4294901760, %v1352_v27 }
 0x20c   :  { %v1578_v57 = vsub.f32 %v3522_v36, %v4149_v10  ;;  %1524 = vmatpush.msrb.mxu2 %v3432_v18  ;;  %1568 = vmatpush.msrb.mxu3 %v1567_v51  ;;  %v1583_v3 = vand.u32 4294901760, %v3578_v16  ;;  %v4152_v51 = vand.u32 4294901760, %v3386_v0  ;;  %v3623_v34 = vsub.f32 %v3259_v45, %v3596_v41 }
 0x20d   :  { %v3601_v10 = vsub.f32 %v1183_v22, %v3589_v26  ;;  %1456 = vmatpush.msrb.mxu0 %v4151_v6  ;;  %1354 = vmatpush.msra.mxu1 %v1353_v43  ;;  %v4154_v0 = vand.u32 4294901760, %v3392_v49  ;;  %v4155_v45 = vand.u32 4294901760, %v3419_v58  ;;  %v4157_v58 = vand.u32 4294901760, %v3539_v38 }
 0x20e   :  { %1526 = vmatpush.msrb.mxu2 %v3459_v14  ;;  %v3606_v27 = vpop.permute.xlu2 %1166  ;;  %1574 = vmatpush.msrb.mxu3 %v1573_v59  ;;  %v1579_v50 = vand.u32 4294901760, %v1578_v57  ;;  %v1584_v19 = vsub.f32 %v3578_v16, %v1583_v3  ;;  %v1590_v59 = vsub.f32 %v3551_v4, %v4153_v40  ;;  %v1607_v49 = vand.u32 4294901760, %v3623_v34 }
 0x20f   :  { %v1171_v22 = vsel %vm53_vm8, %v1165_v47, %v3606_v27  ;;  %1460 = vmatpush.msrb.mxu0 %v4152_v51  ;;  %v1595_v57 = vand.u32 4294901760, %v3601_v10  ;;  %1360 = vmatpush.msra.mxu1 %v1359_v42 }
 0x210   :  { %1528 = vmatpush.msrb.mxu2 %v3475_v54  ;;  %v3625_v43 = vand.u32 4294901760, %v1171_v22  ;;  %1580 = vmatpush.msrb.mxu3 %v1579_v50  ;;  %v1585_v47 = vand.u32 4294901760, %v1584_v19  ;;  %v1591_v42 = vand.u32 4294901760, %v1590_v59 }
 0x211   :  { %1362 = vmatmul.f32.vlgmr.msra.gmra.mxu1 %v3415_v11  ;;  %1464 = vmatpush.msrb.mxu0 %v4154_v0  ;;  %v1596_v6 = vsub.f32 %v3601_v10, %v1595_v57 }
 0x212   :  { %v3634_v51 = vsub.f32 %v1171_v22, %v3625_v43  ;;  %1494 = vmatpush.msrb.mxu1 %v3335_v60  ;;  %1530 = vmatpush.msrb.mxu2 %v3506_v55  ;;  %v4156_v22 = vand.u32 4294901760, %v3482_v12 }
 0x213   :  { %1586 = vmatpush.msrb.mxu3 %v1585_v47  ;;  %1468 = vmatpush.msrb.mxu0 %v4155_v45  ;;  %v1597_v50 = vand.u32 4294901760, %v1596_v6 }
 0x214   :  { %1496 = vmatpush.msrb.mxu1 %v3388_v48  ;;  %1532 = vmatpush.msrb.mxu2 %v3560_v33  ;;  %v1601_v19 = vand.u32 4294901760, %v3634_v51  ;;  %v1608_v48 = vsub.f32 %v3623_v34, %v1607_v49  ;;  %v1253_v59 = vpop.permute.xlu0 %1252 }
 0x215   :  { %1592 = vmatpush.msrb.mxu3 %v1591_v42  ;;  %1472 = vmatpush.msrb.mxu0 %v4156_v22 }
 0x216   :  { %1498 = vmatpush.msrb.mxu1 %v3362_v17  ;;  %1534 = vmatpush.msrb.mxu2 %v3531_v5  ;;  %v1602_v60 = vsub.f32 %v3634_v51, %v1601_v19  ;;  %v4158_v17 = vand.u32 4294901760, %v3519_v63  ;;  %v1609_v40 = vand.u32 4294901760, %v1608_v48  ;;  %v3680_v38 = vpop.permute.xlu2 %1228 }
 0x217   :  { %1598 = vmatpush.msrb.mxu3 %v1597_v50  ;;  %1476 = vmatpush.msrb.mxu0 %v4157_v58 }
 0x218   :  { %1500 = vmatpush.msrb.mxu1 %v3370_v15  ;;  %1536 = vmatpush.msrb.mxu2 %v3589_v26  ;;  %v1603_v12 = vand.u32 4294901760, %v1602_v60  ;;  %v3666_v15 = vpop.permute.xlu1 %1240 }
 0x219   :  { %1480 = vmatpush.msrb.mxu0 %v4158_v17  ;;  %v3852_v17 = vand.u32 4294901760, %v3281_v44 }
 0x21a   :  { %1502 = vmatpush.msrb.mxu1 %v3375_v52  ;;  %1604 = vmatpush.msrb.mxu3 %v1603_v12  ;;  %v4159_v52 = vand.u32 4294901760, %v3468_v13 }
 0x21b   :  { %1538 = vmatpush.msrb.mxu2 %v3625_v43  ;;  %1482 = vmatmul.f32.vlgmr.msrb.gmra.mxu0 %v3415_v11 }
 0x21c   :  { %1504 = vmatpush.msrb.mxu1 %v3409_v30  ;;  %1610 = vmatpush.msrb.mxu3 %v1609_v40  ;;  %v4160_v30 = vand.u32 4294901760, %v3489_v61  ;;  %v3690_v63 = vpop.permute.xlu0 %1216 }
 0x21d   :  { %1625 = vmatpush.msra.mxu0 %v3468_v13  ;;  %1540 = vmatpush.msrb.mxu2 %v3596_v41  ;;  %v4161_v13 = vand.u32 4294901760, %v3504_v23  ;;  %v1221_v22 = vsel %vm105_vm3, %v3690_v63, %v3324_v56 }
 0x21e   :  { %1744 = vmatpush.msra.mxu3 %v3432_v18  ;;  %1546 = vmatmul.f32.vlgmr.msrb.gmra.mxu2 %v3535_v53 }
 0x21f   :  { %1628 = vmatpush.msra.mxu0 %v3489_v61  ;;  %1698 = vmatpush.msra.mxu2 %v4159_v52  ;;  %v1242_v61 = vsel %vm131_vm1, %v3380_v29, %v3666_v15 }
 0x220   :  { %1506 = vmatpush.msrb.mxu1 %v3470_v46  ;;  %1746 = vmatpush.msra.mxu3 %v3459_v14  ;;  %v1254_v46 = vsel %vm144_vm2, %v3356_v20, %v1253_v59  ;;  %v3716_v29 = vand.u32 4294901760, %v1242_v61 }
 0x221   :  { %1612 = vmatmul.f32.vlgmr.msrb.gmra.mxu3 %v3415_v11  ;;  %1631 = vmatpush.msra.mxu0 %v3504_v23  ;;  %v3703_v20 = vand.u32 4294901760, %v1254_v46  ;;  %v4163_v23 = vand.u32 4294901760, %v3551_v4 }
 0x222   :  { %1702 = vmatpush.msra.mxu2 %v4160_v30  ;;  %1508 = vmatpush.msrb.mxu1 %v3533_v8  ;;  %v3705_v8 = vpop.permute.xlu1 %1204 }
 0x223   :  { %1748 = vmatpush.msra.mxu3 %v3475_v54  ;;  %1634 = vmatpush.msra.mxu0 %v3522_v36 }
 0x224   :  { %1706 = vmatpush.msra.mxu2 %v4161_v13  ;;  %1510 = vmatpush.msrb.mxu1 %v3486_v28  ;;  %v4162_v28 = vand.u32 4294901760, %v3522_v36  ;;  %v3753_v36 = vpop.permute.xlu0 %1180 }
 0x225   :  { %1750 = vmatpush.msra.mxu3 %v3506_v55  ;;  %1512 = vmatmul.f32.vlgmr.msrb.gmra.mxu1 %v3415_v11  ;;  %v1182_v0 = vsel %vm66_vm6, %v3569_v24, %v3753_v36 }
 0x226   :  { %1637 = vmatpush.msra.mxu0 %v3578_v16  ;;  %1664 = vmatpush.msra.mxu1 %v3432_v18  ;;  %v1230_v18 = vsel %vm118_vm0, %v3434_v37, %v3680_v38  ;;  %v3728_v16 = vsub.f32 %v1254_v46, %v3703_v20  ;;  %v3734_v37 = vpop.permute.xlu2 %1192  ;;  %v3808_v42 = vand.u32 4294901760, %v1182_v0 }
 0x227   :  { %1710 = vmatpush.msra.mxu2 %v4162_v28  ;;  %1752 = vmatpush.msra.mxu3 %v3560_v33  ;;  %v1197_v13 = vsel %vm79_vm5, %v3734_v37, %v3340_v25  ;;  %v4164_v25 = vld [vmem:[#allocation10_spill] sm:$0xff] }
 0x228   :  { %1640 = vmatpush.msra.mxu0 %v3551_v4  ;;  %1666 = vmatpush.msra.mxu1 %v3459_v14  ;;  %v1218_v14 = vsel %vm105_vm3, %v3491_v62, %v3690_v63  ;;  %v3744_v62 = vsub.f32 %v1242_v61, %v3716_v29  ;;  %v3847_v12 = vsub.f32 %v1182_v0, %v3808_v42 }
 0x229   :  { %1714 = vmatpush.msra.mxu2 %v1583_v3  ;;  %1754 = vmatpush.msra.mxu3 %v3531_v5  ;;  %v3730_v3 = vand.u32 4294901760, %v1230_v18  ;;  %v3746_v4 = vand.u32 4294901760, %v1218_v14 }
 0x22a   :  { %1643 = vmatpush.msra.mxu0 %v3601_v10  ;;  %1668 = vmatpush.msra.mxu1 %v3475_v54  ;;  %v1206_v54 = vsel %vm92_vm4, %v3543_v9, %v3705_v8  ;;  %v1809_v9 = vand.u32 4294901760, %v3728_v16  ;;  %v1815_v47 = vand.u32 4294901760, %v3744_v62 }
 0x22b   :  { %1718 = vmatpush.msra.mxu2 %v4163_v23  ;;  %1756 = vmatpush.msra.mxu3 %v3589_v26  ;;  %v3760_v10 = vsub.f32 %v1230_v18, %v3730_v3  ;;  %v1185_v18 = vsel %vm66_vm6, %v3753_v36, %v4164_v25  ;;  %v3897_v23 = vsub.f32 %v3281_v44, %v3852_v17  ;;  %v4165_v36 = vld [vmem:[#allocation11_spill] sm:$0xff] }
 0x22c   :  { %1646 = vmatpush.msra.mxu0 %v3634_v51  ;;  %1670 = vmatpush.msra.mxu1 %v3506_v55  ;;  %v1257_v55 = vsel %vm144_vm2, %v1253_v59, %v3319_v21  ;;  %v3774_v21 = vsub.f32 %v1218_v14, %v3746_v4  ;;  %v1810_v24 = vsub.f32 %v3728_v16, %v1809_v9 }
 0x22d   :  { %1722 = vmatpush.msra.mxu2 %v1595_v57  ;;  %1758 = vmatpush.msra.mxu3 %v3625_v43  ;;  %v3766_v57 = vand.u32 4294901760, %v1206_v54  ;;  %v1233_v51 = vsel %vm118_vm0, %v3680_v38, %v3326_v2  ;;  %v1816_v50 = vsub.f32 %v3744_v62, %v1815_v47  ;;  %v3869_v38 = vand.u32 4294901760, %v1221_v22 }
 0x22e   :  { %1649 = vmatpush.msra.mxu0 %v3623_v34  ;;  %1672 = vmatpush.msra.mxu1 %v3560_v33  ;;  %v1194_v33 = vsel %vm79_vm5, %v3493_v35, %v3734_v37  ;;  %v3780_v35 = vpop.permute.xlu1 %1168  ;;  %v1245_v34 = vsel %vm131_vm1, %v3666_v15, %v3330_v1  ;;  %v1821_v1 = vand.u32 4294901760, %v3760_v10  ;;  %v1811_v48 = vand.u32 4294901760, %v1810_v24 }
 0x22f   :  { %1726 = vmatpush.msra.mxu2 %v1601_v19  ;;  %1652 = vmatmul.f32.vlgmr.msra.gmra.mxu0 %v3447_v32  ;;  %v3791_v6 = vand.u32 4294901760, %v1194_v33  ;;  %v3803_v45 = vsub.f32 %v1206_v54, %v3766_v57  ;;  %v3816_v2 = vand.u32 4294901760, %v1245_v34  ;;  %v1817_v59 = vand.u32 4294901760, %v1816_v50 }
 0x230   :  { %1760 = vmatpush.msra.mxu3 %v3596_v41  ;;  %1774 = vmatpush.msrb.mxu0 %v3703_v20  ;;  %v1822_v58 = vsub.f32 %v3760_v10, %v1821_v1  ;;  %v1173_v0 = vsel %vm53_vm8, %v3780_v35, %v4165_v36  ;;  %v3923_v50 = vand.u32 4294901760, %v1185_v18 }
 0x231   :  { %1674 = vmatpush.msra.mxu1 %v3531_v5  ;;  %1730 = vmatpush.msra.mxu2 %v1607_v49  ;;  %v3785_v5 = vand.u32 4294901760, %v1257_v55  ;;  %v1827_v49 = vand.u32 4294901760, %v3774_v21  ;;  %v1833_v56 = vand.u32 4294901760, %v3803_v45  ;;  %v3855_v40 = vsub.f32 %v1245_v34, %v3816_v2 }
 0x232   :  { %1914 = vmatpush.msrb.mxu3 %v3703_v20  ;;  %1776 = vmatpush.msrb.mxu0 %v3716_v29  ;;  %v1823_v63 = vand.u32 4294901760, %v1822_v58  ;;  %v3938_v58 = vand.u32 4294901760, %v1173_v0 }
 0x233   :  { %1875 = vmatpush.msrb.mxu2 %v3728_v16  ;;  %1676 = vmatpush.msra.mxu1 %v3589_v26  ;;  %v1170_v26 = vsel %vm53_vm8, %v3606_v27, %v3780_v35  ;;  %v3825_v19 = vsub.f32 %v1257_v55, %v3785_v5  ;;  %v3827_v27 = vand.u32 4294901760, %v1233_v51  ;;  %v1828_v15 = vsub.f32 %v3774_v21, %v1827_v49 }
 0x234   :  { %1916 = vmatpush.msrb.mxu3 %v3716_v29  ;;  %1732 = vmatmul.f32.vlgmr.msra.gmra.mxu2 %v3415_v11  ;;  %v3838_v60 = vand.u32 4294901760, %v1170_v26  ;;  %v1834_v61 = vsub.f32 %v3803_v45, %v1833_v56  ;;  %v2065_v37 = vand.u32 4294901760, %v3855_v40  ;;  %v3904_v55 = vsub.f32 %v1221_v22, %v3869_v38 }
 0x235   :  { %1778 = vmatpush.msrb.mxu0 %v3730_v3  ;;  %1878 = vmatpush.msrb.mxu2 %v3744_v62  ;;  %v2059_v52 = vand.u32 4294901760, %v3825_v19  ;;  %v3867_v30 = vsub.f32 %v1233_v51, %v3827_v27  ;;  %v1829_v14 = vand.u32 4294901760, %v1828_v15  ;;  %v1857_v22 = vand.u32 4294901760, %v3897_v23 }
 0x236   :  { %1678 = vmatpush.msra.mxu1 %v3625_v43  ;;  %1918 = vmatpush.msrb.mxu3 %v3730_v3  ;;  %v3834_v43 = vsub.f32 %v1194_v33, %v3791_v6  ;;  %v3879_v46 = vsub.f32 %v1170_v26, %v3838_v60  ;;  %v3906_v33 = vand.u32 4294901760, %v1197_v13  ;;  %v1835_v34 = vand.u32 4294901760, %v1834_v61 }
 0x237   :  { %1762 = vmatmul.f32.vlgmr.msra.gmra.mxu3 %v3415_v11  ;;  %1780 = vmatpush.msrb.mxu0 %v3746_v4  ;;  %v2060_v54 = vsub.f32 %v3825_v19, %v2059_v52  ;;  %v2071_v51 = vand.u32 4294901760, %v3867_v30  ;;  %v2066_v35 = vsub.f32 %v3855_v40, %v2065_v37  ;;  %v3953_v61 = vsub.f32 %v1185_v18, %v3923_v50 }
 0x238   :  { %1881 = vmatpush.msrb.mxu2 %v3760_v10  ;;  %1680 = vmatpush.msra.mxu1 %v3596_v41  ;;  %v1209_v41 = vsel %vm92_vm4, %v3705_v8, %v3328_v39  ;;  %v1839_v39 = vand.u32 4294901760, %v3834_v43  ;;  %v1845_v8 = vand.u32 4294901760, %v3847_v12  ;;  %v1851_v24 = vand.u32 4294901760, %v3879_v46 }
 0x239   :  { %1920 = vmatpush.msrb.mxu3 %v3746_v4  ;;  %1684 = vmatmul.f32.vlgmr.msra.gmra.mxu1 %v3479_v31  ;;  %v3885_v28 = vand.u32 4294901760, %v1209_v41  ;;  %v2061_v15 = vand.u32 4294901760, %v2060_v54  ;;  %v2067_v16 = vand.u32 4294901760, %v2066_v35  ;;  %v4166_v54 = vld [vmem:[#allocation9_spill] sm:$0xff]  ;;  %v3966_v18 = vsub.f32 %v1173_v0, %v3938_v58 }
 0x23a   :  { %1782 = vmatpush.msrb.mxu0 %v3766_v57  ;;  %1812 = vmatpush.msrb.mxu1 %v1811_v48  ;;  %v1840_v44 = vsub.f32 %v3834_v43, %v1839_v39  ;;  %v1846_v7 = vsub.f32 %v3847_v12, %v1845_v8  ;;  %v3936_v48 = vsub.f32 %v1197_v13, %v3906_v33 }
 0x23b   :  { %1884 = vmatpush.msrb.mxu2 %v3774_v21  ;;  %1922 = vmatpush.msrb.mxu3 %v3766_v57  ;;  %v3921_v26 = vsub.f32 %v1209_v41, %v3885_v28  ;;  %v1852_v13 = vsub.f32 %v3879_v46, %v1851_v24 }
 0x23c   :  { %1784 = vmatpush.msrb.mxu0 %v3791_v6  ;;  %1818 = vmatpush.msrb.mxu1 %v1817_v59  ;;  %v1841_v41 = vand.u32 4294901760, %v1840_v44  ;;  %v2077_v59 = vand.u32 4294901760, %v3904_v55  ;;  %v1847_v25 = vand.u32 4294901760, %v1846_v7  ;;  %v3963_v44 = vand.u32 4294901760, %v4166_v54 }
 0x23d   :  { %1887 = vmatpush.msrb.mxu2 %v3803_v45  ;;  %1924 = vmatpush.msrb.mxu3 %v3791_v6  ;;  %v2089_v62 = vand.u32 4294901760, %v3936_v48  ;;  %v2095_v7 = vand.u32 4294901760, %v3953_v61 }
 0x23e   :  { %1786 = vmatpush.msrb.mxu0 %v3808_v42  ;;  %1824 = vmatpush.msrb.mxu1 %v1823_v63  ;;  %v2072_v63 = vsub.f32 %v3867_v30, %v2071_v51  ;;  %v2078_v36 = vsub.f32 %v3904_v55, %v2077_v59 }
 0x23f   :  { %1890 = vmatpush.msrb.mxu2 %v3834_v43  ;;  %1926 = vmatpush.msrb.mxu3 %v3808_v42 }
 0x240   :  { %1788 = vmatpush.msrb.mxu0 %v3838_v60  ;;  %1830 = vmatpush.msrb.mxu1 %v1829_v14  ;;  %v2083_v14 = vand.u32 4294901760, %v3921_v26  ;;  %v2079_v10 = vand.u32 4294901760, %v2078_v36 }
 0x241   :  { %1893 = vmatpush.msrb.mxu2 %v3847_v12  ;;  %1928 = vmatpush.msrb.mxu3 %v3838_v60 }
 0x242   :  { %1790 = vmatpush.msrb.mxu0 %v3852_v17  ;;  %1836 = vmatpush.msrb.mxu1 %v1835_v34  ;;  %v2073_v34 = vand.u32 4294901760, %v2072_v63  ;;  %v2084_v0 = vsub.f32 %v3921_v26, %v2083_v14  ;;  %v2096_v63 = vsub.f32 %v3953_v61, %v2095_v7 }
 0x243   :  { %1896 = vmatpush.msrb.mxu2 %v3879_v46  ;;  %1796 = vmatmul.f32.vlgmr.msrb.gmra.mxu0 %v3535_v53 }
 0x244   :  { %1930 = vmatpush.msrb.mxu3 %v3852_v17  ;;  %1948 = vmatpush.msra.mxu0 %v1809_v9  ;;  %v1858_v9 = vsub.f32 %v3897_v23, %v1857_v22  ;;  %v2097_v45 = vand.u32 4294901760, %v2096_v63 }
 0x245   :  { %1842 = vmatpush.msrb.mxu1 %v1841_v41  ;;  %1899 = vmatpush.msrb.mxu2 %v3897_v23  ;;  %v3983_v41 = vsub.f32 %v4166_v54, %v3963_v44 }
 0x246   :  { %2062 = vmatpush.msra.mxu3 %v2061_v15  ;;  %1952 = vmatpush.msra.mxu0 %v1815_v47  ;;  %v1853_v47 = vand.u32 4294901760, %v1852_v13  ;;  %v1859_v35 = vand.u32 4294901760, %v1858_v9  ;;  %v2101_v15 = vand.u32 4294901760, %v3966_v18  ;;  %v2085_v13 = vand.u32 4294901760, %v2084_v0 }
 0x247   :  { %2024 = vmatpush.msra.mxu2 %v3785_v5  ;;  %1848 = vmatpush.msrb.mxu1 %v1847_v25  ;;  %v2107_v21 = vand.u32 4294901760, %v3983_v41 }
 0x248   :  { %2068 = vmatpush.msra.mxu3 %v2067_v16  ;;  %1902 = vmatmul.f32.vlgmr.msrb.gmra.mxu2 %v3447_v32  ;;  %v2102_v25 = vsub.f32 %v3966_v18, %v2101_v15 }
 0x249   :  { %1956 = vmatpush.msra.mxu0 %v1821_v1  ;;  %2026 = vmatpush.msra.mxu2 %v3816_v2  ;;  %v2090_v1 = vsub.f32 %v3936_v48, %v2089_v62 }
 0x24a   :  { %1854 = vmatpush.msrb.mxu1 %v1853_v47  ;;  %2074 = vmatpush.msra.mxu3 %v2073_v34  ;;  %v2103_v43 = vand.u32 4294901760, %v2102_v25 }
 0x24b   :  { %1934 = vmatmul.f32.vlgmr.msrb.gmra.mxu3 %v3479_v31  ;;  %1960 = vmatpush.msra.mxu0 %v1827_v49  ;;  %v2091_v49 = vand.u32 4294901760, %v2090_v1 }
 0x24c   :  { %2028 = vmatpush.msra.mxu2 %v3827_v27  ;;  %1860 = vmatpush.msrb.mxu1 %v1859_v35 }
 0x24d   :  { %2080 = vmatpush.msra.mxu3 %v2079_v10  ;;  %1862 = vmatmul.f32.vlgmr.msrb.gmra.mxu1 %v3415_v11 }
 0x24e   :  { %1964 = vmatpush.msra.mxu0 %v1833_v56  ;;  %1994 = vmatpush.msra.mxu1 %v3703_v20  ;;  %v2108_v20 = vsub.f32 %v3983_v41, %v2107_v21 }
 0x24f   :  { %2030 = vmatpush.msra.mxu2 %v3869_v38  ;;  %2086 = vmatpush.msra.mxu3 %v2085_v13 }
 0x250   :  { %1968 = vmatpush.msra.mxu0 %v1839_v39  ;;  %1996 = vmatpush.msra.mxu1 %v3716_v29  ;;  %v2109_v29 = vand.u32 4294901760, %v2108_v20 }
 0x251   :  { %2032 = vmatpush.msra.mxu2 %v3885_v28  ;;  %2092 = vmatpush.msra.mxu3 %v2091_v49 }
 0x252   :  { %1972 = vmatpush.msra.mxu0 %v1845_v8  ;;  %1998 = vmatpush.msra.mxu1 %v3730_v3 }
 0x253   :  { %2034 = vmatpush.msra.mxu2 %v3906_v33  ;;  %2098 = vmatpush.msra.mxu3 %v2097_v45 }
 0x254   :  { %1976 = vmatpush.msra.mxu0 %v1851_v24  ;;  %2000 = vmatpush.msra.mxu1 %v3746_v4 }
 0x255   :  { %2036 = vmatpush.msra.mxu2 %v3923_v50  ;;  %2104 = vmatpush.msra.mxu3 %v2103_v43 }
 0x256   :  { %1980 = vmatpush.msra.mxu0 %v1857_v22  ;;  %2002 = vmatpush.msra.mxu1 %v3766_v57 }
 0x257   :  { %2038 = vmatpush.msra.mxu2 %v3938_v58  ;;  %1982 = vmatmul.f32.vlgmr.msra.gmra.mxu0 %v3415_v11 }
 0x258   :  { %2110 = vmatpush.msra.mxu3 %v2109_v29  ;;  %2125 = vmatpush.msrb.mxu0 %v3825_v19 }
 0x259   :  { %2004 = vmatpush.msra.mxu1 %v3791_v6  ;;  %2040 = vmatpush.msra.mxu2 %v3963_v44 }
 0x25a   :  { %2244 = vmatpush.msrb.mxu3 %v3785_v5  ;;  %2046 = vmatmul.f32.vlgmr.msra.gmra.mxu2 %v3535_v53  ;;  %v1261_v53 = vpop.permute.xlu2 %1260 }
 0x25b   :  { %2128 = vmatpush.msrb.mxu0 %v3855_v40  ;;  %2198 = vmatpush.msrb.mxu2 %v2059_v52 }
 0x25c   :  { %2006 = vmatpush.msra.mxu1 %v3808_v42  ;;  %2246 = vmatpush.msrb.mxu3 %v3816_v2 }
 0x25d   :  { %2112 = vmatmul.f32.vlgmr.msra.gmra.mxu3 %v3415_v11  ;;  %2131 = vmatpush.msrb.mxu0 %v3867_v30 }
 0x25e   :  { %2202 = vmatpush.msrb.mxu2 %v2065_v37  ;;  %2008 = vmatpush.msra.mxu1 %v3838_v60 }
 0x25f   :  { %2248 = vmatpush.msrb.mxu3 %v3827_v27  ;;  %2134 = vmatpush.msrb.mxu0 %v3904_v55 }
 0x260   :  { %2206 = vmatpush.msrb.mxu2 %v2071_v51  ;;  %2010 = vmatpush.msra.mxu1 %v3852_v17 }
 0x261   :  { %2250 = vmatpush.msrb.mxu3 %v3869_v38  ;;  %2012 = vmatmul.f32.vlgmr.msra.gmra.mxu1 %v3415_v11 }
 0x262   :  { %2137 = vmatpush.msrb.mxu0 %v3921_v26  ;;  %2164 = vmatpush.msrb.mxu1 %v3785_v5 }
 0x263   :  { %2210 = vmatpush.msrb.mxu2 %v2077_v59  ;;  %2252 = vmatpush.msrb.mxu3 %v3885_v28 }
 0x264   :  { %2140 = vmatpush.msrb.mxu0 %v3936_v48  ;;  %2166 = vmatpush.msrb.mxu1 %v3816_v2 }
 0x265   :  { %2214 = vmatpush.msrb.mxu2 %v2083_v14  ;;  %2254 = vmatpush.msrb.mxu3 %v3906_v33 }
 0x266   :  { %2143 = vmatpush.msrb.mxu0 %v3953_v61  ;;  %2168 = vmatpush.msrb.mxu1 %v3827_v27 }
 0x267   :  { %2218 = vmatpush.msrb.mxu2 %v2089_v62  ;;  %2256 = vmatpush.msrb.mxu3 %v3923_v50 }
 0x268   :  { %2146 = vmatpush.msrb.mxu0 %v3966_v18  ;;  %2170 = vmatpush.msrb.mxu1 %v3869_v38 }
 0x269   :  { %2222 = vmatpush.msrb.mxu2 %v2095_v7  ;;  %2258 = vmatpush.msrb.mxu3 %v3938_v58 }
 0x26a   :  { %2149 = vmatpush.msrb.mxu0 %v3983_v41  ;;  %2172 = vmatpush.msrb.mxu1 %v3885_v28 }
 0x26b   :  { %2226 = vmatpush.msrb.mxu2 %v2101_v15  ;;  %2152 = vmatmul.f32.vlgmr.msrb.gmra.mxu0 %v3447_v32 }
 0x26c   :  { %2260 = vmatpush.msrb.mxu3 %v3963_v44  ;;  %2174 = vmatpush.msrb.mxu1 %v3906_v33 }
 0x26d   :  { %2230 = vmatpush.msrb.mxu2 %v2107_v21  ;;  %2262 = vmatmul.f32.vlgmr.msrb.gmra.mxu3 %v3415_v11 }
 0x26e   :  { %2176 = vmatpush.msrb.mxu1 %v3923_v50  ;;  %2232 = vmatmul.f32.vlgmr.msrb.gmra.mxu2 %v3415_v11 }
 0x270   :  { %2178 = vmatpush.msrb.mxu1 %v3938_v58 }
 0x272   :  { %2180 = vmatpush.msrb.mxu1 %v3963_v44 }
 0x273   :  { %2184 = vmatmul.f32.vlgmr.msrb.gmra.mxu1 %v3479_v31 }
 0x285   :  { %v1297_v32 = vpop.f32.mrf.mxu0 }
 0x286   :  { %v1298_v4 = vadd.f32 %v1297_v32, %v1261_v53 }
 0x28d   :  { %v1403_v5 = vpop.f32.mrf.mxu2 }
 0x28e   :  { %v1363_v3 = vpop.f32.mrf.mxu1  ;;  %v1435_v42 = vpop.f32.mrf.mxu3 }
 0x28f   :  { %v1364_v57 = vadd.f32 %v1363_v3, %v1298_v4 }
 0x291   :  { %v1404_v6 = vadd.f32 %v1403_v5, %v1364_v57 }
 0x293   :  { %v1436_v19 = vadd.f32 %v1435_v42, %v1404_v6 }
 0x298   :  { %v1483_v2 = vpop.f32.mrf.mxu0 }
 0x299   :  { %v1484_v27 = vadd.f32 %v1483_v2, %v1436_v19 }
 0x2a1   :  { %v1547_v12 = vpop.f32.mrf.mxu2 }
 0x2a2   :  { %v1513_v60 = vpop.f32.mrf.mxu1  ;;  %v1548_v17 = vadd.f32 %v1547_v12, %v1261_v53 }
 0x2a3   :  { %v1514_v56 = vadd.f32 %v1513_v60, %v1484_v27 }
 0x2a4   :  { %v1613_v40 = vpop.f32.mrf.mxu3 }
 0x2a5   :  { %v2266_v11 = vmax.f32 %v1514_v56, 0.0  ;;  %v1614_v31 = vadd.f32 %v1613_v40, %v1548_v17 }
 0x2a7   :  { %2270 = vst [vmem:[#allocation5] sm:$0xff] %v2266_v11 }
 0x2ac   :  { %v1653_v52 = vpop.f32.mrf.mxu0 }
 0x2ad   :  { %v1654_v30 = vadd.f32 %v1653_v52, %v1614_v31 }
 0x2b6   :  { %v1685_v38 = vpop.f32.mrf.mxu1 }
 0x2b7   :  { %v1686_v39 = vadd.f32 %v1685_v38, %v1654_v30  ;;  %v1733_v46 = vpop.f32.mrf.mxu2 }
 0x2b9   :  { %v1734_v28 = vadd.f32 %v1733_v46, %v1686_v39 }
 0x2ba   :  { %v1763_v8 = vpop.f32.mrf.mxu3 }
 0x2bb   :  { %v1764_v23 = vadd.f32 %v1763_v8, %v1734_v28 }
 0x2bd   :  { %v2267_v37 = vmax.f32 %v1764_v23, 0.0 }
 0x2bf   :  { %2271 = vst [vmem:[#allocation5 + $0x8] sm:$0xff] %v2267_v37 }
 0x2c0   :  { %v1797_v55 = vpop.f32.mrf.mxu0 }
 0x2c1   :  { %v1798_v24 = vadd.f32 %v1797_v55, %v1261_v53 }
 0x2ca   :  { %v1863_v33 = vpop.f32.mrf.mxu1 }
 0x2cb   :  { %v1864_v51 = vadd.f32 %v1863_v33, %v1798_v24  ;;  %v1903_v26 = vpop.f32.mrf.mxu2 }
 0x2cd   :  { %v1904_v50 = vadd.f32 %v1903_v26, %v1864_v51 }
 0x2ce   :  { %v1935_v22 = vpop.f32.mrf.mxu3 }
 0x2cf   :  { %v1936_v58 = vadd.f32 %v1935_v22, %v1904_v50 }
 0x2d4   :  { %v1983_v48 = vpop.f32.mrf.mxu0 }
 0x2d5   :  { %v1984_v59 = vadd.f32 %v1983_v48, %v1936_v58 }
 0x2dd   :  { %v2047_v9 = vpop.f32.mrf.mxu2 }
 0x2de   :  { %v2013_v61 = vpop.f32.mrf.mxu1  ;;  %v2048_v54 = vadd.f32 %v2047_v9, %v1261_v53 }
 0x2df   :  { %v2014_v14 = vadd.f32 %v2013_v61, %v1984_v59 }
 0x2e0   :  { %v2113_v44 = vpop.f32.mrf.mxu3 }
 0x2e1   :  { %v2268_v16 = vmax.f32 %v2014_v14, 0.0  ;;  %v2114_v36 = vadd.f32 %v2113_v44, %v2048_v54 }
 0x2e3   :  { %2272 = vst [vmem:[#allocation5 + $0x10] sm:$0xff] %v2268_v16 }
 0x2e8   :  { %v2153_v18 = vpop.f32.mrf.mxu0 }
 0x2e9   :  { %v2154_v62 = vadd.f32 %v2153_v18, %v2114_v36 }
 0x2f0   :  { %v2185_v47 = vpop.f32.mrf.mxu1  ;;  %v2263_v7 = vpop.f32.mrf.mxu3 }
 0x2f1   :  { %v2186_v34 = vadd.f32 %v2185_v47, %v2154_v62  ;;  %v2233_v0 = vpop.f32.mrf.mxu2 }
 0x2f3   :  { %v2234_v35 = vadd.f32 %v2233_v0, %v2186_v34 }
 0x2f5   :  { %v2264_v41 = vadd.f32 %v2263_v7, %v2234_v35 }
 0x2f7   :  { %v2269_v10 = vmax.f32 %v2264_v41, 0.0 }
 0x2f9   :  { %2273 = vst [vmem:[#allocation5 + $0x18] sm:$0xff] %v2269_v10 }
 0x2fa   :  { %2284 = dma.vmem_to_hbm [thread:$0]  %s2280_s10, 512, %s2282_s13, [#allocation4]  }
 0x2fb   :  { %2354 = dma.done.wait [#allocation4], 512  }
 0x2fc   :  { %2355 = vsyncadd [#allocation4], 4294966784 }
 0x2fd   :  { %2289 = vsyncpa [#allocation3], 1 }
 0x2fe   :  { %2290 = vsyncpa [#allocation4], 1 }

</bundles_post_ra>
